<compile_context>
chip_gen: v6e
topology: v6e:2x2x1
jax: 0.10.0
libtpu: 0.0.40
codegen_flags: <defaults>
</compile_context>

<pallas_src>
import jax
import jax.numpy as jnp
from jax.experimental import pallas as pl
from jax.experimental.pallas import tpu as pltpu

# ---- model hyperparameters ----
INPUT_SIZE = 16
EXPANSION = 8
DEPTH = 3                          # -> (DEPTH - 1) = 2 residual linear layers
WIDTH = EXPANSION * INPUT_SIZE     # 128 (lane aligned)


def _num_tensorcores_per_device():
    """Best-effort TensorCore count per JAX device (affects tiling only, not correctness)."""
    try:
        kind = (jax.devices()[0].device_kind or "").lower()
    except Exception:
        return 1
    # v7x (and v4/v5p megacore) expose 2 TensorCores per device; v5e/v6e have 1.
    return 2 if any(tag in kind for tag in ("7", "v4", "v5p")) else 1


def _choose_tile_b(B, max_tile=2048):
    """One batch tile per TensorCore (sublane-aligned), capped to keep VMEM tiny."""
    n_cores = _num_tensorcores_per_device()
    tile = -(-B // n_cores)                 # ceil(B / n_cores)
    tile = min(max_tile, tile)
    tile = ((tile + 7) // 8) * 8            # sublane (8) alignment
    return max(tile, 8)


def ernn_kernel(x_ref, rep_ref, w_ref, b_ref, wc_ref, bc_ref, o_ref):
    """One batch tile of the full forward pass.

    x_ref  : (TILE_B, INPUT_SIZE)      f32   streamed raw input (16 lanes)
    rep_ref: (INPUT_SIZE, WIDTH)       bf16  constant 0/1 replication matrix (tile -> 128 lanes)
    w_ref  : (DEPTH-1, WIDTH, WIDTH)   bf16  residual-layer weights, (in, out) layout (resident)
    b_ref  : (DEPTH-1, 1, WIDTH)       f32   residual-layer biases (resident)
    wc_ref : (WIDTH, INPUT_SIZE)       bf16  collapse weight, unpadded (resident)
    bc_ref : (1, INPUT_SIZE)           f32   collapse bias (resident)
    o_ref  : (TILE_B, INPUT_SIZE)      f32   unpadded output block
    """
    # z0 = tile(x, expansion), built on the MXU via the 0/1 replication matrix.
    xb = x_ref[...].astype(jnp.bfloat16)                              # (TB, 16)
    z = jnp.dot(xb, rep_ref[...], preferred_element_type=jnp.float32)  # (TB, 128) f32

    # depth-1 residual tanh layers (small static trip count -> unrolled Python loop).
    # bf16 matmul inputs, f32 accumulation / bias / tanh / residual.
    for l in range(DEPTH - 1):
        h = jnp.dot(z.astype(jnp.bfloat16), w_ref[l],
                    preferred_element_type=jnp.float32) + b_ref[l]
        z = z + jnp.tanh(h)

    # final collapse to the true 16-wide output (no lane padding).
    y = jnp.dot(z.astype(jnp.bfloat16), wc_ref[...],
                preferred_element_type=jnp.float32) + bc_ref[...]
    o_ref[...] = y.astype(o_ref.dtype)


def prepare_params(w_res, b_res, w_col, b_col):
    """One-time parameter prep (bf16 weights + replication matrix). Call outside the hot path."""
    col = jax.lax.broadcasted_iota(jnp.int32, (INPUT_SIZE, WIDTH), 1)
    row = jax.lax.broadcasted_iota(jnp.int32, (INPUT_SIZE, WIDTH), 0)
    rep = (col % INPUT_SIZE == row).astype(jnp.bfloat16)     # rep[i, r*16+i] = 1
    return (rep,
            w_res.astype(jnp.bfloat16),
            b_res.astype(jnp.float32).reshape(DEPTH - 1, 1, WIDTH),
            w_col.astype(jnp.bfloat16),
            b_col.astype(jnp.float32).reshape(1, INPUT_SIZE))


def ernn_forward(x, params):
    rep, w_res, b_res, w_col, b_col = params
    B, F = x.shape
    assert F == INPUT_SIZE and w_res.shape == (DEPTH - 1, WIDTH, WIDTH)

    tile_b = _choose_tile_b(B)
    n_tiles = pl.cdiv(B, tile_b)
    b_pad = n_tiles * tile_b
    xp = x if b_pad == B else jnp.pad(x, ((0, b_pad - B), (0, 0)))

    y = pl.pallas_call(
        ernn_kernel,
        out_shape=jax.ShapeDtypeStruct((b_pad, F), x.dtype),
        grid=(n_tiles,),
        in_specs=[
            pl.BlockSpec((tile_b, F), lambda i: (i, 0)),                    # streamed x (16 lanes)
            pl.BlockSpec((INPUT_SIZE, WIDTH), lambda i: (0, 0)),            # resident replication
            pl.BlockSpec((DEPTH - 1, WIDTH, WIDTH), lambda i: (0, 0, 0)),   # resident W (bf16)
            pl.BlockSpec((DEPTH - 1, 1, WIDTH), lambda i: (0, 0, 0)),       # resident b (f32)
            pl.BlockSpec((WIDTH, F), lambda i: (0, 0)),                     # resident Wc (bf16)
            pl.BlockSpec((1, F), lambda i: (0, 0)),                         # resident bc (f32)
        ],
        out_specs=pl.BlockSpec((tile_b, F), lambda i: (i, 0)),              # unpadded output
        compiler_params=pltpu.CompilerParams(
            dimension_semantics=("parallel",),        # megacore split on 2-TC chips
        ),
    )(xp, rep, w_res, b_res, w_col, b_col)

    return y if b_pad == B else y[:B]


def ernn_reference(x, w_res, b_res, w_col, b_col):
    """Plain-JAX f32 reference mirroring the PyTorch forward."""
    z = jnp.tile(x, (1, EXPANSION))
    for l in range(DEPTH - 1):
        z = z + jnp.tanh(z @ w_res[l] + b_res[l])
    return z @ w_col + b_col


if __name__ == "__main__":
    key = jax.random.PRNGKey(0)
    kx, kw, kb, kwc, kbc = jax.random.split(key, 5)

    BATCH = 300   # deliberately not a tile multiple -> exercises the batch-pad path
    bound = 1.0 / jnp.sqrt(WIDTH)
    x = jax.random.normal(kx, (BATCH, INPUT_SIZE), dtype=jnp.float32)
    w_res = jax.random.uniform(kw, (DEPTH - 1, WIDTH, WIDTH),
                               minval=-bound, maxval=bound, dtype=jnp.float32)
    b_res = jax.random.uniform(kb, (DEPTH - 1, 1, WIDTH),
                               minval=-bound, maxval=bound, dtype=jnp.float32)
    w_col = jax.random.uniform(kwc, (WIDTH, INPUT_SIZE),
                               minval=-bound, maxval=bound, dtype=jnp.float32)
    b_col = jax.random.uniform(kbc, (1, INPUT_SIZE),
                               minval=-bound, maxval=bound, dtype=jnp.float32)

    # One-time parameter prep (bf16 weights, replication matrix), then a single jit'd forward.
    params = jax.tree_util.tree_map(jax.block_until_ready, prepare_params(w_res, b_res, w_col, b_col))
    fwd = jax.jit(ernn_forward)

    out = jax.block_until_ready(fwd(x, params))

    ref = ernn_reference(x, w_res, b_res, w_col, b_col)
    assert out.shape == (BATCH, INPUT_SIZE)
    # bf16 matmul weights with f32 accumulation -> loosened tolerance vs f32 reference.
    assert jnp.allclose(out, ref, atol=2e-2, rtol=2e-2), float(jnp.max(jnp.abs(out - ref)))

    print("KERNEL_OK")
</pallas_src>

<mosaic_0001>
module attributes {stable_mosaic.version = 11 : i64} {
  func.func @ernn_kernel(%arg0: i32, %arg1: memref<304x16xf32, #tpu.memory_space<vmem>>, %arg2: memref<16x128xbf16, #tpu.memory_space<vmem>>, %arg3: memref<2x128x128xbf16, #tpu.memory_space<vmem>>, %arg4: memref<2x1x128xf32, #tpu.memory_space<vmem>>, %arg5: memref<128x16xbf16, #tpu.memory_space<vmem>>, %arg6: memref<1x16xf32, #tpu.memory_space<vmem>>, %arg7: memref<304x16xf32, #tpu.memory_space<vmem>>) attributes {dimension_semantics = [#tpu.dimension_semantics<parallel>], iteration_bounds = array<i64: 1>, scalar_prefetch = 0 : i64, scratch_operands = 0 : i64, tpu.core_type = #tpu.core_type<tc>, window_params = [{transform_indices = @transform_0, window_bounds = array<i64: 304, 16>}, {pipeline_mode = #tpu.pipeline_mode<synchronous>, transform_indices = @transform_1, window_bounds = array<i64: 16, 128>}, {pipeline_mode = #tpu.pipeline_mode<synchronous>, transform_indices = @transform_2, window_bounds = array<i64: 2, 128, 128>}, {pipeline_mode = #tpu.pipeline_mode<synchronous>, transform_indices = @transform_3, window_bounds = array<i64: 2, 1, 128>}, {pipeline_mode = #tpu.pipeline_mode<synchronous>, transform_indices = @transform_4, window_bounds = array<i64: 128, 16>}, {pipeline_mode = #tpu.pipeline_mode<synchronous>, transform_indices = @transform_5, window_bounds = array<i64: 1, 16>}, {transform_indices = @transform_6, window_bounds = array<i64: 304, 16>}]} {
    %c0 = arith.constant 0 : index
    %c0_0 = arith.constant 0 : index
    %0 = vector.load %arg1[%c0, %c0_0] : memref<304x16xf32, #tpu.memory_space<vmem>>, vector<304x16xf32>
    %1 = arith.truncf %0 : vector<304x16xf32> to vector<304x16xbf16>
    %c0_1 = arith.constant 0 : index
    %c0_2 = arith.constant 0 : index
    %2 = vector.load %arg2[%c0_1, %c0_2] : memref<16x128xbf16, #tpu.memory_space<vmem>>, vector<16x128xbf16>
    %cst = arith.constant dense<0.000000e+00> : vector<304x128xf32>
    %3 = tpu.matmul %1, %2, %cst {dimension_numbers = #tpu.dot_dimension_numbers<[1], [0], [0], [1], [0, 0, 1, 1], [], []>} : vector<304x16xbf16>, vector<16x128xbf16>, vector<304x128xf32> -> vector<304x128xf32>
    %4 = arith.truncf %3 : vector<304x128xf32> to vector<304x128xbf16>
    %c0_3 = arith.constant 0 : index
    %c0_4 = arith.constant 0 : index
    %c0_5 = arith.constant 0 : index
    %5 = vector.load %arg3[%c0_3, %c0_4, %c0_5] : memref<2x128x128xbf16, #tpu.memory_space<vmem>>, vector<1x128x128xbf16>
    %6 = vector.shape_cast %5 : vector<1x128x128xbf16> to vector<128x128xbf16>
    %cst_6 = arith.constant dense<0.000000e+00> : vector<304x128xf32>
    %7 = tpu.matmul %4, %6, %cst_6 {dimension_numbers = #tpu.dot_dimension_numbers<[1], [0], [0], [1], [0, 0, 1, 1], [], []>} : vector<304x128xbf16>, vector<128x128xbf16>, vector<304x128xf32> -> vector<304x128xf32>
    %c0_7 = arith.constant 0 : index
    %c0_8 = arith.constant 0 : index
    %c0_9 = arith.constant 0 : index
    %8 = vector.load %arg4[%c0_7, %c0_8, %c0_9] : memref<2x1x128xf32, #tpu.memory_space<vmem>>, vector<1x1x128xf32>
    %9 = vector.shape_cast %8 : vector<1x1x128xf32> to vector<1x128xf32>
    %10 = vector.broadcast %9 : vector<1x128xf32> to vector<304x128xf32>
    %11 = arith.addf %7, %10 : vector<304x128xf32>
    %12 = math.tanh %11 : vector<304x128xf32>
    %13 = arith.addf %3, %12 : vector<304x128xf32>
    %14 = arith.truncf %13 : vector<304x128xf32> to vector<304x128xbf16>
    %c1 = arith.constant 1 : index
    %c0_10 = arith.constant 0 : index
    %c0_11 = arith.constant 0 : index
    %15 = vector.load %arg3[%c1, %c0_10, %c0_11] : memref<2x128x128xbf16, #tpu.memory_space<vmem>>, vector<1x128x128xbf16>
    %16 = vector.shape_cast %15 : vector<1x128x128xbf16> to vector<128x128xbf16>
    %cst_12 = arith.constant dense<0.000000e+00> : vector<304x128xf32>
    %17 = tpu.matmul %14, %16, %cst_12 {dimension_numbers = #tpu.dot_dimension_numbers<[1], [0], [0], [1], [0, 0, 1, 1], [], []>} : vector<304x128xbf16>, vector<128x128xbf16>, vector<304x128xf32> -> vector<304x128xf32>
    %c1_13 = arith.constant 1 : index
    %c0_14 = arith.constant 0 : index
    %c0_15 = arith.constant 0 : index
    %18 = vector.load %arg4[%c1_13, %c0_14, %c0_15] : memref<2x1x128xf32, #tpu.memory_space<vmem>>, vector<1x1x128xf32>
    %19 = vector.shape_cast %18 : vector<1x1x128xf32> to vector<1x128xf32>
    %20 = vector.broadcast %19 : vector<1x128xf32> to vector<304x128xf32>
    %21 = arith.addf %17, %20 : vector<304x128xf32>
    %22 = math.tanh %21 : vector<304x128xf32>
    %23 = arith.addf %13, %22 : vector<304x128xf32>
    %24 = arith.truncf %23 : vector<304x128xf32> to vector<304x128xbf16>
    %c0_16 = arith.constant 0 : index
    %c0_17 = arith.constant 0 : index
    %25 = vector.load %arg5[%c0_16, %c0_17] : memref<128x16xbf16, #tpu.memory_space<vmem>>, vector<128x16xbf16>
    %cst_18 = arith.constant dense<0.000000e+00> : vector<304x16xf32>
    %26 = tpu.matmul %24, %25, %cst_18 {dimension_numbers = #tpu.dot_dimension_numbers<[1], [0], [0], [1], [0, 0, 1, 1], [], []>} : vector<304x128xbf16>, vector<128x16xbf16>, vector<304x16xf32> -> vector<304x16xf32>
    %c0_19 = arith.constant 0 : index
    %c0_20 = arith.constant 0 : index
    %27 = vector.load %arg6[%c0_19, %c0_20] : memref<1x16xf32, #tpu.memory_space<vmem>>, vector<1x16xf32>
    %28 = vector.broadcast %27 : vector<1x16xf32> to vector<304x16xf32>
    %29 = arith.addf %26, %28 : vector<304x16xf32>
    %c0_21 = arith.constant 0 : index
    %c0_22 = arith.constant 0 : index
    %30 = vector.load %arg7[%c0_21, %c0_22] : memref<304x16xf32, #tpu.memory_space<vmem>>, vector<304x16xf32>
    tpu.vector_store %arg7[%c0_21, %c0_22], %29 {strides = array<i32>} : memref<304x16xf32, #tpu.memory_space<vmem>>, vector<304x16xf32>,
    return
  }
  func.func @transform_0(%arg0: i32) -> (i32, i32) {
    %c0_i32 = arith.constant 0 : i32
    %c0_i32_0 = arith.constant 0 : i32
    return %arg0, %c0_i32 : i32, i32
  }
  func.func @transform_1(%arg0: i32) -> (i32, i32) {
    %c0_i32 = arith.constant 0 : i32
    %c0_i32_0 = arith.constant 0 : i32
    %c0_i32_1 = arith.constant 0 : i32
    return %c0_i32, %c0_i32_0 : i32, i32
  }
  func.func @transform_2(%arg0: i32) -> (i32, i32, i32) {
    %c0_i32 = arith.constant 0 : i32
    %c0_i32_0 = arith.constant 0 : i32
    %c0_i32_1 = arith.constant 0 : i32
    %c0_i32_2 = arith.constant 0 : i32
    return %c0_i32, %c0_i32_0, %c0_i32_1 : i32, i32, i32
  }
  func.func @transform_3(%arg0: i32) -> (i32, i32, i32) {
    %c0_i32 = arith.constant 0 : i32
    %c0_i32_0 = arith.constant 0 : i32
    %c0_i32_1 = arith.constant 0 : i32
    %c0_i32_2 = arith.constant 0 : i32
    return %c0_i32, %c0_i32_0, %c0_i32_1 : i32, i32, i32
  }
  func.func @transform_4(%arg0: i32) -> (i32, i32) {
    %c0_i32 = arith.constant 0 : i32
    %c0_i32_0 = arith.constant 0 : i32
    %c0_i32_1 = arith.constant 0 : i32
    return %c0_i32, %c0_i32_0 : i32, i32
  }
  func.func @transform_5(%arg0: i32) -> (i32, i32) {
    %c0_i32 = arith.constant 0 : i32
    %c0_i32_0 = arith.constant 0 : i32
    %c0_i32_1 = arith.constant 0 : i32
    return %c0_i32, %c0_i32_0 : i32, i32
  }
  func.func @transform_6(%arg0: i32) -> (i32, i32) {
    %c0_i32 = arith.constant 0 : i32
    %c0_i32_0 = arith.constant 0 : i32
    return %arg0, %c0_i32 : i32, i32
  }
}

</mosaic_0001>

<bundles_post_ra>
// kernel: ernn_forward.1
= control target key start
LH: loop header
LB: loop body
LE: loop exit
PB: predicated region body
PF: predicated region fallthrough
CT: control target
= control target key end

     0   :  { %v2067_v0 = vmov 0.0   ;;  %vm2068_vm0 = vmmov 0   ;;  %vm89_vm1 = vcmask 130048   ;;  %s3082_s1 = inlined_call_operand.vmem [shape: bf16[16,128], index: 1, kind: input, shape index: {}]   ;;  %s3083_s0 = inlined_call_operand.vmem [shape: f32[304,16], index: 0, kind: input, shape index: {}]   ;;  %s3084_s2 = inlined_call_operand.vmem [shape: bf16[2,128,128], index: 2, kind: input, shape index: {}]   ;;  %s3085_s4 = inlined_call_operand.vmem [shape: bf16[128,16], index: 4, kind: input, shape index: {}]   ;;  %s3086_s3 = inlined_call_operand.vmem [shape: f32[2,1,128], index: 3, kind: input, shape index: {}]   ;;  %s3087_s5 = inlined_call_operand.vmem [shape: f32[1,16], index: 5, kind: input, shape index: {}]   ;;  %s3088_s6 = inlined_call_operand.vmem [shape: f32[304,16], index: 6, kind: output, shape index: {}]  }
   0x1   :  { %1518 = vmatprep.subr.bf16.mxu0 %v2067_v0  ;;  %v1890_v1 = vld [vmem:[%s3082_s1] sm:$0xff]   ;;  %1520 = vmatprep.mubr.msk.bf16.mxu0 %vm2068_vm0, %v2067_v0  ;;  %v25_v3 = vld [vmem:[%s3083_s0 + $0x8] sm:$0xff]  ;;  %v26_v5 = vld [vmem:[%s3083_s0 + $0x10] sm:$0xff] }
   0x2   :  { %v24_v2 = vld [vmem:[%s3083_s0] sm:$0xff]  ;;  %1596 = vmatprep.subr.bf16.mxu1 %v2067_v0  ;;  %1612 = vmatprep.mubr.msk.bf16.mxu1 %vm2068_vm0, %v2067_v0  ;;  %v27_v6 = vld [vmem:[%s3083_s0 + $0x18] sm:$0xff]  ;;  %v29_v9 = vld [vmem:[%s3083_s0 + $0x28] sm:$0xff] }
   0x3   :  { %1519 = vmatpush3.bf16.msra.mxu0 %v1890_v1  ;;  %v62_v4 = vpack.c.bf16 %v25_v3, %v24_v2  ;;  %v63_v7 = vpack.c.bf16 %v27_v6, %v26_v5  ;;  %v28_v8 = vld [vmem:[%s3083_s0 + $0x20] sm:$0xff]  ;;  %v30_v11 = vld [vmem:[%s3083_s0 + $0x30] sm:$0xff]  ;;  %v31_v12 = vld [vmem:[%s3083_s0 + $0x38] sm:$0xff] }
   0x4   :  { %1688 = vmatprep.subr.bf16.mxu0 %v2067_v0  ;;  %v64_v10 = vpack.c.bf16 %v29_v9, %v28_v8  ;;  %v1891_v13 = vld [vmem:[%s3084_s2 + $0x38] sm:$0xff]   ;;  %v1892_v14 = vld [vmem:[%s3084_s2 + $0x30] sm:$0xff]   ;;  %v65_v15 = vpack.c.bf16 %v31_v12, %v30_v11  ;;  %v1893_v16 = vld [vmem:[%s3084_s2 + $0x28] sm:$0xff]  }
   0x5   :  { %1597 = vmatpush3.bf16.msra.mxu1 %v1891_v13  ;;  %v32_v17 = vld [vmem:[%s3083_s0 + $0x40] sm:$0xff]  ;;  %v33_v18 = vld [vmem:[%s3083_s0 + $0x48] sm:$0xff]  ;;  %v1895_v21 = vld [vmem:[%s3084_s2 + $0x18] sm:$0xff]  }
   0x6   :  { %1521 = vmatmul.mubr.msk.bf16.vlgmr.msra.gmra.mxu0 %vm89_vm1, %v62_v4  ;;  %1598 = vmatprep.subr.bf16.mxu1 %v2067_v0  ;;  %v1894_v19 = vld [vmem:[%s3084_s2 + $0x20] sm:$0xff]   ;;  %v66_v20 = vpack.c.bf16 %v33_v18, %v32_v17  ;;  %v34_v22 = vld [vmem:[%s3083_s0 + $0x50] sm:$0xff]  ;;  %v35_v23 = vld [vmem:[%s3083_s0 + $0x58] sm:$0xff] }
   0x7   :  { %1524 = vmatprep.mubr.msk.bf16.mxu0 %vm2068_vm0, %v2067_v0  ;;  %v1896_v24 = vld [vmem:[%s3084_s2 + $0x10] sm:$0xff]   ;;  %v67_v25 = vpack.c.bf16 %v35_v23, %v34_v22  ;;  %v36_v26 = vld [vmem:[%s3083_s0 + $0x60] sm:$0xff]  ;;  %v37_v27 = vld [vmem:[%s3083_s0 + $0x68] sm:$0xff] }
   0x8   :  { %v68_v28 = vpack.c.bf16 %v37_v27, %v36_v26  ;;  %v38_v29 = vld [vmem:[%s3083_s0 + $0x70] sm:$0xff]  ;;  %v39_v30 = vld [vmem:[%s3083_s0 + $0x78] sm:$0xff]  ;;  %v40_v32 = vld [vmem:[%s3083_s0 + $0x80] sm:$0xff] }
   0x9   :  { %1599 = vmatpush3.bf16.msra.mxu1 %v1892_v14  ;;  %v69_v31 = vpack.c.bf16 %v39_v30, %v38_v29  ;;  %v41_v33 = vld [vmem:[%s3083_s0 + $0x88] sm:$0xff]  ;;  %v42_v36 = vld [vmem:[%s3083_s0 + $0x90] sm:$0xff]  ;;  %v43_v37 = vld [vmem:[%s3083_s0 + $0x98] sm:$0xff] }
   0xa   :  { %1600 = vmatprep.subr.bf16.mxu1 %v2067_v0  ;;  %v70_v34 = vpack.c.bf16 %v41_v33, %v40_v32  ;;  %v1897_v35 = vld [vmem:[%s3084_s2 + $0x8] sm:$0xff]   ;;  %v1898_v38 = vld [vmem:[%s3084_s2] sm:$0xff]   ;;  %v71_v39 = vpack.c.bf16 %v43_v37, %v42_v36  ;;  %v46_v43 = vld [vmem:[%s3083_s0 + $0xb0] sm:$0xff] }
   0xb   :  { %v44_v40 = vld [vmem:[%s3083_s0 + $0xa0] sm:$0xff]  ;;  %v45_v41 = vld [vmem:[%s3083_s0 + $0xa8] sm:$0xff]  ;;  %v47_v44 = vld [vmem:[%s3083_s0 + $0xb8] sm:$0xff] }
   0xc   :  { %v72_v42 = vpack.c.bf16 %v45_v41, %v44_v40  ;;  %v73_v45 = vpack.c.bf16 %v47_v44, %v46_v43  ;;  %v48_v46 = vld [vmem:[%s3083_s0 + $0xc0] sm:$0xff]  ;;  %v49_v47 = vld [vmem:[%s3083_s0 + $0xc8] sm:$0xff]  ;;  %v50_v49 = vld [vmem:[%s3083_s0 + $0xd0] sm:$0xff] }
   0xd   :  { %1601 = vmatpush3.bf16.msra.mxu1 %v1893_v16  ;;  %v74_v48 = vpack.c.bf16 %v49_v47, %v48_v46  ;;  %v51_v50 = vld [vmem:[%s3083_s0 + $0xd8] sm:$0xff]  ;;  %v52_v52 = vld [vmem:[%s3083_s0 + $0xe0] sm:$0xff]  ;;  %v53_v53 = vld [vmem:[%s3083_s0 + $0xe8] sm:$0xff] }
   0xe   :  { %1525 = vmatmul.mubr.msk.bf16.gmra.mxu0 %vm89_vm1, %v63_v7  ;;  %1602 = vmatprep.subr.bf16.mxu1 %v2067_v0  ;;  %v75_v51 = vpack.c.bf16 %v51_v50, %v50_v49  ;;  %v76_v54 = vpack.c.bf16 %v53_v53, %v52_v52  ;;  %v54_v55 = vld [vmem:[%s3083_s0 + $0xf0] sm:$0xff]  ;;  %v55_v56 = vld [vmem:[%s3083_s0 + $0xf8] sm:$0xff]  ;;  %v56_v58 = vld [vmem:[%s3083_s0 + $0x100] sm:$0xff] }
   0xf   :  { %1528 = vmatprep.mubr.msk.bf16.mxu0 %vm2068_vm0, %v2067_v0  ;;  %v77_v57 = vpack.c.bf16 %v55_v56, %v54_v55  ;;  %v57_v59 = vld [vmem:[%s3083_s0 + $0x108] sm:$0xff]  ;;  %v58_v61 = vld [vmem:[%s3083_s0 + $0x110] sm:$0xff]  ;;  %v59_v62 = vld [vmem:[%s3083_s0 + $0x118] sm:$0xff] }
  0x10   :  { %v78_v60 = vpack.c.bf16 %v57_v59, %v56_v58  ;;  %v79_v63 = vpack.c.bf16 %v59_v62, %v58_v61  ;;  %v1899_v1 = vld [vmem:[%s3084_s2 + $0x78] sm:$0xff]   ;;  %v60_v2 = vld [vmem:[%s3083_s0 + $0x120] sm:$0xff]  ;;  %v61_v3 = vld [vmem:[%s3083_s0 + $0x128] sm:$0xff] }
  0x11   :  { %1603 = vmatpush3.bf16.msra.mxu1 %v1894_v19  ;;  %1689 = vmatpush3.bf16.msra.mxu0 %v1899_v1  ;;  %v80_v4 = vpack.c.bf16 %v61_v3, %v60_v2  ;;  %v1900_v5 = vld [vmem:[%s3084_s2 + $0x70] sm:$0xff]   ;;  %v1901_v6 = vld [vmem:[%s3084_s2 + $0x68] sm:$0xff]   ;;  %v1902_v8 = vld [vmem:[%s3084_s2 + $0x60] sm:$0xff]  }
  0x12   :  { %1604 = vmatprep.subr.bf16.mxu1 %v2067_v0  ;;  %1690 = vmatprep.subr.bf16.mxu0 %v2067_v0  ;;  %v1903_v22 = vld [vmem:[%s3084_s2 + $0x58] sm:$0xff]   ;;  %v1905_v27 = vld [vmem:[%s3084_s2 + $0x48] sm:$0xff]   ;;  %v1906_v61 = vld [vmem:[%s3084_s2 + $0x40] sm:$0xff]  }
  0x15   :  { %1605 = vmatpush3.bf16.msra.mxu1 %v1895_v21  ;;  %1691 = vmatpush3.bf16.msra.mxu0 %v1900_v5 }
  0x16   :  { %1529 = vmatmul.mubr.msk.bf16.gmra.mxu0 %vm89_vm1, %v64_v10  ;;  %1606 = vmatprep.subr.bf16.mxu1 %v2067_v0 }
  0x17   :  { %1532 = vmatprep.mubr.msk.bf16.mxu0 %vm2068_vm0, %v2067_v0  ;;  %1692 = vmatprep.subr.bf16.mxu0 %v2067_v0 }
  0x19   :  { %1607 = vmatpush3.bf16.msra.mxu1 %v1896_v24  ;;  %1693 = vmatpush3.bf16.msra.mxu0 %v1901_v6  ;;  %v1904_v24 = vld [vmem:[%s3084_s2 + $0x50] sm:$0xff]  }
  0x1a   :  { %1608 = vmatprep.subr.bf16.mxu1 %v2067_v0  ;;  %1694 = vmatprep.subr.bf16.mxu0 %v2067_v0 }
  0x1d   :  { %1609 = vmatpush3.bf16.msra.mxu1 %v1897_v35  ;;  %1695 = vmatpush3.bf16.msra.mxu0 %v1902_v8 }
  0x1e   :  { %1533 = vmatmul.mubr.msk.bf16.gmra.mxu0 %vm89_vm1, %v65_v15  ;;  %1610 = vmatprep.subr.bf16.mxu1 %v2067_v0 }
  0x1f   :  { %1536 = vmatprep.mubr.msk.bf16.mxu0 %vm2068_vm0, %v2067_v0  ;;  %1696 = vmatprep.subr.bf16.mxu0 %v2067_v0 }
  0x21   :  { %1611 = vmatpush3.bf16.msra.mxu1 %v1898_v38  ;;  %1697 = vmatpush3.bf16.msra.mxu0 %v1903_v22 }
  0x22   :  { %1872 = vmatprep.subr.bf16.mxu1 %v2067_v0  ;;  %1698 = vmatprep.subr.bf16.mxu0 %v2067_v0 }
  0x25   :  { %1699 = vmatpush3.bf16.msra.mxu0 %v1904_v24 }
  0x26   :  { %1537 = vmatmul.mubr.msk.bf16.gmra.mxu0 %vm89_vm1, %v66_v20  ;;  %1700 = vmatprep.subr.bf16.mxu0 %v2067_v0 }
  0x27   :  { %1540 = vmatprep.mubr.msk.bf16.mxu0 %vm2068_vm0, %v2067_v0 }
  0x29   :  { %1701 = vmatpush3.bf16.msra.mxu0 %v1905_v27 }
  0x2a   :  { %1702 = vmatprep.subr.bf16.mxu0 %v2067_v0 }
  0x2d   :  { %1703 = vmatpush3.bf16.msra.mxu0 %v1906_v61 }
  0x2e   :  { %1541 = vmatmul.mubr.msk.bf16.gmra.mxu0 %vm89_vm1, %v67_v25  ;;  %1780 = vmatprep.subr.bf16.mxu0 %v2067_v0 }
  0x2f   :  { %1544 = vmatprep.mubr.msk.bf16.mxu0 %vm2068_vm0, %v2067_v0 }
  0x36   :  { %1545 = vmatmul.mubr.msk.bf16.gmra.mxu0 %vm89_vm1, %v68_v28 }
  0x37   :  { %1548 = vmatprep.mubr.msk.bf16.mxu0 %vm2068_vm0, %v2067_v0 }
  0x3e   :  { %1549 = vmatmul.mubr.msk.bf16.gmra.mxu0 %vm89_vm1, %v69_v31 }
  0x3f   :  { %1552 = vmatprep.mubr.msk.bf16.mxu0 %vm2068_vm0, %v2067_v0 }
  0x46   :  { %1553 = vmatmul.mubr.msk.bf16.gmra.mxu0 %vm89_vm1, %v70_v34 }
  0x47   :  { %1556 = vmatprep.mubr.msk.bf16.mxu0 %vm2068_vm0, %v2067_v0 }
  0x4e   :  { %1557 = vmatmul.mubr.msk.bf16.gmra.mxu0 %vm89_vm1, %v71_v39 }
  0x4f   :  { %1560 = vmatprep.mubr.msk.bf16.mxu0 %vm2068_vm0, %v2067_v0 }
  0x56   :  { %1561 = vmatmul.mubr.msk.bf16.gmra.mxu0 %vm89_vm1, %v72_v42 }
  0x57   :  { %1564 = vmatprep.mubr.msk.bf16.mxu0 %vm2068_vm0, %v2067_v0 }
  0x5e   :  { %1565 = vmatmul.mubr.msk.bf16.gmra.mxu0 %vm89_vm1, %v73_v45 }
  0x5f   :  { %1568 = vmatprep.mubr.msk.bf16.mxu0 %vm2068_vm0, %v2067_v0 }
  0x66   :  { %1569 = vmatmul.mubr.msk.bf16.gmra.mxu0 %vm89_vm1, %v74_v48 }
  0x67   :  { %1572 = vmatprep.mubr.msk.bf16.mxu0 %vm2068_vm0, %v2067_v0 }
  0x6e   :  { %1573 = vmatmul.mubr.msk.bf16.gmra.mxu0 %vm89_vm1, %v75_v51 }
  0x6f   :  { %1576 = vmatprep.mubr.msk.bf16.mxu0 %vm2068_vm0, %v2067_v0 }
  0x76   :  { %1577 = vmatmul.mubr.msk.bf16.gmra.mxu0 %vm89_vm1, %v76_v54 }
  0x77   :  { %1580 = vmatprep.mubr.msk.bf16.mxu0 %vm2068_vm0, %v2067_v0 }
  0x7e   :  { %1581 = vmatmul.mubr.msk.bf16.gmra.mxu0 %vm89_vm1, %v77_v57 }
  0x7f   :  { %1584 = vmatprep.mubr.msk.bf16.mxu0 %vm2068_vm0, %v2067_v0 }
  0x86   :  { %1585 = vmatmul.mubr.msk.bf16.gmra.mxu0 %vm89_vm1, %v78_v60 }
  0x87   :  { %1588 = vmatprep.mubr.msk.bf16.mxu0 %vm2068_vm0, %v2067_v0 }
  0x8e   :  { %1589 = vmatmul.mubr.msk.bf16.gmra.mxu0 %vm89_vm1, %v79_v63 }
  0x8f   :  { %1592 = vmatprep.mubr.msk.bf16.mxu0 %vm2068_vm0, %v2067_v0 }
  0x96   :  { %1593 = vmatmul.mubr.msk.bf16.gmra.mxu0 %vm89_vm1, %v80_v4 }
  0x97   :  { %1704 = vmatprep.mubr.msk.bf16.mxu0 %vm2068_vm0, %v2067_v0 }
  0xc6   :  { %v2329_v7 = vpop.f32.mrf.mxu0 }
  0xc8   :  { %v1522_v9 = vpop.f32.mrf.mxu0 }
  0xca   :  { %v2335_v10 = vpop.f32.mrf.mxu0 }
  0xcb   :  { %v332_v11 = vpack.c.bf16 %v2335_v10, %v2329_v7 }
  0xcc   :  { %v1523_v12 = vpop.f32.mrf.mxu0 }
  0xcd   :  { %1613 = vmatmul.mubr.bf16.vlgmr.msra.gmra.mxu1 %v332_v11 }
  0xce   :  { %v2339_v13 = vpop.f32.mrf.mxu0  ;;  %1616 = vmatprep.mubr.msk.bf16.mxu1 %vm2068_vm0, %v2067_v0 }
  0xd0   :  { %v1526_v14 = vpop.f32.mrf.mxu0 }
  0xd2   :  { %v2343_v15 = vpop.f32.mrf.mxu0 }
  0xd3   :  { %v333_v16 = vpack.c.bf16 %v2343_v15, %v2339_v13 }
  0xd4   :  { %v1527_v17 = vpop.f32.mrf.mxu0 }
  0xd5   :  { %1617 = vmatmul.mubr.bf16.gmra.mxu1 %v333_v16 }
  0xd6   :  { %v2347_v18 = vpop.f32.mrf.mxu0  ;;  %1620 = vmatprep.mubr.msk.bf16.mxu1 %vm2068_vm0, %v2067_v0 }
  0xd8   :  { %v1530_v19 = vpop.f32.mrf.mxu0 }
  0xda   :  { %v2351_v20 = vpop.f32.mrf.mxu0 }
  0xdb   :  { %v334_v21 = vpack.c.bf16 %v2351_v20, %v2347_v18 }
  0xdc   :  { %v1531_v23 = vpop.f32.mrf.mxu0 }
  0xdd   :  { %1621 = vmatmul.mubr.bf16.gmra.mxu1 %v334_v21 }
  0xde   :  { %v2361_v25 = vpop.f32.mrf.mxu0  ;;  %1624 = vmatprep.mubr.msk.bf16.mxu1 %vm2068_vm0, %v2067_v0 }
  0xe0   :  { %v1534_v26 = vpop.f32.mrf.mxu0 }
  0xe2   :  { %v2369_v28 = vpop.f32.mrf.mxu0 }
  0xe3   :  { %v335_v29 = vpack.c.bf16 %v2369_v28, %v2361_v25 }
  0xe4   :  { %v1535_v30 = vpop.f32.mrf.mxu0 }
  0xe5   :  { %1625 = vmatmul.mubr.bf16.gmra.mxu1 %v335_v29 }
  0xe6   :  { %v2374_v31 = vpop.f32.mrf.mxu0  ;;  %1628 = vmatprep.mubr.msk.bf16.mxu1 %vm2068_vm0, %v2067_v0 }
  0xe8   :  { %v1538_v32 = vpop.f32.mrf.mxu0 }
  0xea   :  { %v2379_v33 = vpop.f32.mrf.mxu0 }
  0xeb   :  { %v336_v34 = vpack.c.bf16 %v2379_v33, %v2374_v31 }
  0xec   :  { %v1539_v35 = vpop.f32.mrf.mxu0 }
  0xed   :  { %1629 = vmatmul.mubr.bf16.gmra.mxu1 %v336_v34 }
  0xee   :  { %v2383_v36 = vpop.f32.mrf.mxu0  ;;  %1632 = vmatprep.mubr.msk.bf16.mxu1 %vm2068_vm0, %v2067_v0 }
  0xf0   :  { %v1542_v37 = vpop.f32.mrf.mxu0 }
  0xf2   :  { %v2387_v38 = vpop.f32.mrf.mxu0 }
  0xf3   :  { %v337_v39 = vpack.c.bf16 %v2387_v38, %v2383_v36 }
  0xf4   :  { %v1543_v40 = vpop.f32.mrf.mxu0 }
  0xf5   :  { %1633 = vmatmul.mubr.bf16.gmra.mxu1 %v337_v39 }
  0xf6   :  { %v2391_v41 = vpop.f32.mrf.mxu0  ;;  %1636 = vmatprep.mubr.msk.bf16.mxu1 %vm2068_vm0, %v2067_v0 }
  0xf8   :  { %v1546_v42 = vpop.f32.mrf.mxu0 }
  0xfa   :  { %v2395_v43 = vpop.f32.mrf.mxu0 }
  0xfb   :  { %v338_v44 = vpack.c.bf16 %v2395_v43, %v2391_v41 }
  0xfc   :  { %v1547_v45 = vpop.f32.mrf.mxu0 }
  0xfd   :  { %1637 = vmatmul.mubr.bf16.gmra.mxu1 %v338_v44 }
  0xfe   :  { %v2399_v46 = vpop.f32.mrf.mxu0  ;;  %1640 = vmatprep.mubr.msk.bf16.mxu1 %vm2068_vm0, %v2067_v0 }
 0x100   :  { %v1550_v47 = vpop.f32.mrf.mxu0 }
 0x102   :  { %v2403_v48 = vpop.f32.mrf.mxu0 }
 0x103   :  { %v339_v49 = vpack.c.bf16 %v2403_v48, %v2399_v46 }
 0x104   :  { %v1551_v50 = vpop.f32.mrf.mxu0 }
 0x105   :  { %1641 = vmatmul.mubr.bf16.gmra.mxu1 %v339_v49 }
 0x106   :  { %v2407_v51 = vpop.f32.mrf.mxu0  ;;  %1644 = vmatprep.mubr.msk.bf16.mxu1 %vm2068_vm0, %v2067_v0 }
 0x108   :  { %v1554_v52 = vpop.f32.mrf.mxu0 }
 0x10a   :  { %v2411_v53 = vpop.f32.mrf.mxu0 }
 0x10b   :  { %v340_v54 = vpack.c.bf16 %v2411_v53, %v2407_v51 }
 0x10c   :  { %v1555_v55 = vpop.f32.mrf.mxu0 }
 0x10d   :  { %1645 = vmatmul.mubr.bf16.gmra.mxu1 %v340_v54 }
 0x10e   :  { %v2415_v56 = vpop.f32.mrf.mxu0  ;;  %1648 = vmatprep.mubr.msk.bf16.mxu1 %vm2068_vm0, %v2067_v0 }
 0x110   :  { %v1558_v57 = vpop.f32.mrf.mxu0 }
 0x112   :  { %v2419_v58 = vpop.f32.mrf.mxu0 }
 0x113   :  { %v341_v59 = vpack.c.bf16 %v2419_v58, %v2415_v56 }
 0x114   :  { %v1559_v60 = vpop.f32.mrf.mxu0 }
 0x115   :  { %1649 = vmatmul.mubr.bf16.gmra.mxu1 %v341_v59 }
 0x116   :  { %v2426_v62 = vpop.f32.mrf.mxu0  ;;  %1652 = vmatprep.mubr.msk.bf16.mxu1 %vm2068_vm0, %v2067_v0 }
 0x118   :  { %v1562_v63 = vpop.f32.mrf.mxu0 }
 0x11a   :  { %v2431_v1 = vpop.f32.mrf.mxu0 }
 0x11b   :  { %v342_v2 = vpack.c.bf16 %v2431_v1, %v2426_v62 }
 0x11c   :  { %v1563_v3 = vpop.f32.mrf.mxu0 }
 0x11d   :  { %1653 = vmatmul.mubr.bf16.gmra.mxu1 %v342_v2  ;;  %v1907_v3 = vld [vmem:[%s3085_s4 + $0x38] sm:$0xff]  }
 0x11e   :  { %v2435_v4 = vpop.f32.mrf.mxu0  ;;  %1656 = vmatprep.mubr.msk.bf16.mxu1 %vm2068_vm0, %v2067_v0  ;;  %1880 = vmatpush3.bf16.msra.mxu1 %v1907_v3 }
 0x11f   :  { %1873 = vmatprep.subr.bf16.mxu1 %v2067_v0 }
 0x120   :  { %v1566_v5 = vpop.f32.mrf.mxu0 }
 0x121   :  { %v1908_v5 = vld [vmem:[%s3085_s4 + $0x30] sm:$0xff]  }
 0x122   :  { %v2439_v6 = vpop.f32.mrf.mxu0  ;;  %1881 = vmatpush3.bf16.msra.mxu1 %v1908_v5 }
 0x123   :  { %v343_v8 = vpack.c.bf16 %v2439_v6, %v2435_v4  ;;  %1874 = vmatprep.subr.bf16.mxu1 %v2067_v0 }
 0x124   :  { %v1567_v9 = vpop.f32.mrf.mxu0 }
 0x125   :  { %1657 = vmatmul.mubr.bf16.gmra.mxu1 %v343_v8  ;;  %v2512_v8 = vld [vmem:[%s3086_s3] ss:$0 sm:$0xff] }
 0x126   :  { %v2443_v11 = vpop.f32.mrf.mxu0  ;;  %1660 = vmatprep.mubr.msk.bf16.mxu1 %vm2068_vm0, %v2067_v0 }
 0x128   :  { %v1570_v12 = vpop.f32.mrf.mxu0 }
 0x12a   :  { %v2447_v14 = vpop.f32.mrf.mxu0 }
 0x12b   :  { %v344_v16 = vpack.c.bf16 %v2447_v14, %v2443_v11 }
 0x12c   :  { %v1571_v17 = vpop.f32.mrf.mxu0 }
 0x12d   :  { %1661 = vmatmul.mubr.bf16.gmra.mxu1 %v344_v16 }
 0x12e   :  { %v2451_v19 = vpop.f32.mrf.mxu0  ;;  %1664 = vmatprep.mubr.msk.bf16.mxu1 %vm2068_vm0, %v2067_v0 }
 0x130   :  { %v1574_v21 = vpop.f32.mrf.mxu0 }
 0x132   :  { %v2455_v22 = vpop.f32.mrf.mxu0 }
 0x133   :  { %v345_v23 = vpack.c.bf16 %v2455_v22, %v2451_v19 }
 0x134   :  { %v1575_v24 = vpop.f32.mrf.mxu0 }
 0x135   :  { %1665 = vmatmul.mubr.bf16.gmra.mxu1 %v345_v23 }
 0x136   :  { %v2459_v26 = vpop.f32.mrf.mxu0  ;;  %1668 = vmatprep.mubr.msk.bf16.mxu1 %vm2068_vm0, %v2067_v0 }
 0x138   :  { %v1578_v27 = vpop.f32.mrf.mxu0 }
 0x13a   :  { %v2463_v29 = vpop.f32.mrf.mxu0 }
 0x13b   :  { %v346_v30 = vpack.c.bf16 %v2463_v29, %v2459_v26 }
 0x13c   :  { %v1579_v32 = vpop.f32.mrf.mxu0 }
 0x13d   :  { %1669 = vmatmul.mubr.bf16.gmra.mxu1 %v346_v30  ;;  %v1909_v32 = vld [vmem:[%s3085_s4 + $0x28] sm:$0xff]  }
 0x13e   :  { %v2467_v34 = vpop.f32.mrf.mxu0  ;;  %1672 = vmatprep.mubr.msk.bf16.mxu1 %vm2068_vm0, %v2067_v0  ;;  %1882 = vmatpush3.bf16.msra.mxu1 %v1909_v32 }
 0x13f   :  { %1875 = vmatprep.subr.bf16.mxu1 %v2067_v0 }
 0x140   :  { %v1582_v35 = vpop.f32.mrf.mxu0 }
 0x142   :  { %v2471_v37 = vpop.f32.mrf.mxu0 }
 0x143   :  { %v347_v39 = vpack.c.bf16 %v2471_v37, %v2467_v34 }
 0x144   :  { %v1583_v40 = vpop.f32.mrf.mxu0 }
 0x145   :  { %1673 = vmatmul.mubr.bf16.gmra.mxu1 %v347_v39 }
 0x146   :  { %v2475_v42 = vpop.f32.mrf.mxu0  ;;  %1676 = vmatprep.mubr.msk.bf16.mxu1 %vm2068_vm0, %v2067_v0 }
 0x148   :  { %v1586_v44 = vpop.f32.mrf.mxu0 }
 0x14a   :  { %v2479_v45 = vpop.f32.mrf.mxu0 }
 0x14b   :  { %v348_v47 = vpack.c.bf16 %v2479_v45, %v2475_v42 }
 0x14c   :  { %v1587_v49 = vpop.f32.mrf.mxu0 }
 0x14d   :  { %1677 = vmatmul.mubr.bf16.gmra.mxu1 %v348_v47 }
 0x14e   :  { %v2483_v50 = vpop.f32.mrf.mxu0  ;;  %1680 = vmatprep.mubr.msk.bf16.mxu1 %vm2068_vm0, %v2067_v0 }
 0x150   :  { %v1590_v52 = vpop.f32.mrf.mxu0 }
 0x152   :  { %v2487_v54 = vpop.f32.mrf.mxu0 }
 0x153   :  { %v349_v55 = vpack.c.bf16 %v2487_v54, %v2483_v50 }
 0x154   :  { %v1591_v57 = vpop.f32.mrf.mxu0 }
 0x155   :  { %1681 = vmatmul.mubr.bf16.gmra.mxu1 %v349_v55 }
 0x156   :  { %v2491_v59 = vpop.f32.mrf.mxu0  ;;  %1684 = vmatprep.mubr.msk.bf16.mxu1 %vm2068_vm0, %v2067_v0 }
 0x158   :  { %v1594_v60 = vpop.f32.mrf.mxu0 }
 0x15a   :  { %v2495_v61 = vpop.f32.mrf.mxu0 }
 0x15b   :  { %v350_v63 = vpack.c.bf16 %v2495_v61, %v2491_v59 }
 0x15c   :  { %v1595_v2 = vpop.f32.mrf.mxu0 }
 0x15d   :  { %1685 = vmatmul.mubr.bf16.gmra.mxu1 %v350_v63 }
 0x15e   :  { %1800 = vmatprep.mubr.msk.bf16.mxu1 %vm2068_vm0, %v2067_v0 }
 0x18d   :  { %v456_v9 = vpop.f32.mrf.mxu1 }
 0x18e   :  { %v457_v12 = vadd.f32 %v2512_v8, %v456_v9 }
 0x18f   :  { %v1614_v16 = vpop.f32.mrf.mxu1 }
 0x190   :  { %1915 = vtanh.f32 %v457_v12 }
 0x191   :  { %v459_v17 = vpop.f32.mrf.mxu1 }
 0x192   :  { %v460_v21 = vadd.f32 %v2512_v8, %v459_v17 }
 0x193   :  { %v1615_v23 = vpop.f32.mrf.mxu1 }
 0x194   :  { %1917 = vtanh.f32 %v460_v21  ;;  %v1910_v21 = vld [vmem:[%s3085_s4 + $0x20] sm:$0xff]  }
 0x195   :  { %v464_v24 = vpop.f32.mrf.mxu1  ;;  %1883 = vmatpush3.bf16.msra.mxu1 %v1910_v21 }
 0x196   :  { %v465_v27 = vadd.f32 %v2512_v8, %v464_v24  ;;  %1876 = vmatprep.subr.bf16.mxu1 %v2067_v0 }
 0x197   :  { %v1618_v30 = vpop.f32.mrf.mxu1 }
 0x198   :  { %1919 = vtanh.f32 %v465_v27 }
 0x199   :  { %v467_v35 = vpop.f32.mrf.mxu1 }
 0x19a   :  { %v468_v39 = vadd.f32 %v2512_v8, %v467_v35 }
 0x19b   :  { %v1619_v40 = vpop.f32.mrf.mxu1 }
 0x19c   :  { %1921 = vtanh.f32 %v468_v39 }
 0x19d   :  { %v472_v44 = vpop.f32.mrf.mxu1  ;;  %v1916_v49 = vpop.eup %1915 }
 0x19e   :  { %v473_v47 = vadd.f32 %v2512_v8, %v472_v44  ;;  %v2525_v63 = vadd.f32 %v1916_v49, %v2329_v7 }
 0x19f   :  { %v1622_v52 = vpop.f32.mrf.mxu1 }
 0x1a0   :  { %1923 = vtanh.f32 %v473_v47 }
 0x1a1   :  { %v1918_v55 = vpop.eup %1917  ;;  %v475_v57 = vpop.f32.mrf.mxu1 }
 0x1a2   :  { %v476_v60 = vadd.f32 %v2512_v8, %v475_v57  ;;  %v2528_v2 = vadd.f32 %v1918_v55, %v2335_v10 }
 0x1a3   :  { %v1623_v9 = vpop.f32.mrf.mxu1 }
 0x1a4   :  { %1925 = vtanh.f32 %v476_v60  ;;  %v683_v12 = vpack.c.bf16 %v2528_v2, %v2525_v63 }
 0x1a5   :  { %v480_v16 = vpop.f32.mrf.mxu1  ;;  %v1920_v23 = vpop.eup %1919 }
 0x1a6   :  { %v481_v17 = vadd.f32 %v2512_v8, %v480_v16  ;;  %1705 = vmatmul.mubr.bf16.vlgmr.msra.gmra.mxu0 %v683_v12  ;;  %v2542_v30 = vadd.f32 %v1920_v23, %v2339_v13 }
 0x1a7   :  { %v1626_v24 = vpop.f32.mrf.mxu1  ;;  %1708 = vmatprep.mubr.msk.bf16.mxu0 %vm2068_vm0, %v2067_v0  ;;  %1781 = vmatpush3.bf16.msra.mxu0 %v1907_v3 }
 0x1a8   :  { %1782 = vmatprep.subr.bf16.mxu0 %v2067_v0  ;;  %1927 = vtanh.f32 %v481_v17 }
 0x1a9   :  { %v1922_v7 = vpop.eup %1921  ;;  %v483_v10 = vpop.f32.mrf.mxu1 }
 0x1aa   :  { %v484_v27 = vadd.f32 %v2512_v8, %v483_v10  ;;  %v2545_v35 = vadd.f32 %v1922_v7, %v2343_v15 }
 0x1ab   :  { %v1627_v39 = vpop.f32.mrf.mxu1  ;;  %1783 = vmatpush3.bf16.msra.mxu0 %v1908_v5 }
 0x1ac   :  { %1929 = vtanh.f32 %v484_v27  ;;  %v684_v3 = vpack.c.bf16 %v2545_v35, %v2542_v30  ;;  %1784 = vmatprep.subr.bf16.mxu0 %v2067_v0  ;;  %v1913_v39 = vld [vmem:[%s3085_s4 + $0x8] sm:$0xff]  }
 0x1ad   :  { %v488_v40 = vpop.f32.mrf.mxu1  ;;  %v1924_v47 = vpop.eup %1923 }
 0x1ae   :  { %v489_v44 = vadd.f32 %v2512_v8, %v488_v40  ;;  %1709 = vmatmul.mubr.bf16.gmra.mxu0 %v684_v3  ;;  %v2556_v52 = vadd.f32 %v1924_v47, %v2347_v18  ;;  %v1911_v18 = vld [vmem:[%s3085_s4 + $0x18] sm:$0xff]  }
 0x1af   :  { %v1630_v49 = vpop.f32.mrf.mxu1  ;;  %1712 = vmatprep.mubr.msk.bf16.mxu0 %vm2068_vm0, %v2067_v0  ;;  %1785 = vmatpush3.bf16.msra.mxu0 %v1909_v32 }
 0x1b0   :  { %1786 = vmatprep.subr.bf16.mxu0 %v2067_v0  ;;  %1931 = vtanh.f32 %v489_v44  ;;  %1884 = vmatpush3.bf16.msra.mxu1 %v1911_v18 }
 0x1b1   :  { %v1926_v13 = vpop.eup %1925  ;;  %v491_v15 = vpop.f32.mrf.mxu1  ;;  %1877 = vmatprep.subr.bf16.mxu1 %v2067_v0 }
 0x1b2   :  { %v492_v5 = vadd.f32 %v2512_v8, %v491_v15  ;;  %v2559_v55 = vadd.f32 %v1926_v13, %v2351_v20  ;;  %v1912_v20 = vld [vmem:[%s3085_s4 + $0x10] sm:$0xff]  }
 0x1b3   :  { %v1631_v57 = vpop.f32.mrf.mxu1  ;;  %1787 = vmatpush3.bf16.msra.mxu0 %v1910_v21 }
 0x1b4   :  { %1933 = vtanh.f32 %v492_v5  ;;  %v685_v60 = vpack.c.bf16 %v2559_v55, %v2556_v52  ;;  %1788 = vmatprep.subr.bf16.mxu0 %v2067_v0  ;;  %1885 = vmatpush3.bf16.msra.mxu1 %v1912_v20 }
 0x1b5   :  { %v496_v32 = vpop.f32.mrf.mxu1  ;;  %v1928_v12 = vpop.eup %1927  ;;  %1878 = vmatprep.subr.bf16.mxu1 %v2067_v0 }
 0x1b6   :  { %v497_v9 = vadd.f32 %v2512_v8, %v496_v32  ;;  %1713 = vmatmul.mubr.bf16.gmra.mxu0 %v685_v60  ;;  %v2577_v24 = vadd.f32 %v1928_v12, %v2361_v25 }
 0x1b7   :  { %v1634_v16 = vpop.f32.mrf.mxu1  ;;  %1716 = vmatprep.mubr.msk.bf16.mxu0 %vm2068_vm0, %v2067_v0  ;;  %1789 = vmatpush3.bf16.msra.mxu0 %v1911_v18 }
 0x1b8   :  { %1790 = vmatprep.subr.bf16.mxu0 %v2067_v0  ;;  %1935 = vtanh.f32 %v497_v9  ;;  %1886 = vmatpush3.bf16.msra.mxu1 %v1913_v39 }
 0x1b9   :  { %v1930_v17 = vpop.eup %1929  ;;  %v499_v21 = vpop.f32.mrf.mxu1  ;;  %1879 = vmatprep.subr.bf16.mxu1 %v2067_v0 }
 0x1ba   :  { %v500_v23 = vadd.f32 %v2512_v8, %v499_v21  ;;  %v2580_v7 = vadd.f32 %v1930_v17, %v2369_v28 }
 0x1bb   :  { %v1635_v10 = vpop.f32.mrf.mxu1  ;;  %1791 = vmatpush3.bf16.msra.mxu0 %v1912_v20 }
 0x1bc   :  { %1937 = vtanh.f32 %v500_v23  ;;  %v686_v27 = vpack.c.bf16 %v2580_v7, %v2577_v24  ;;  %1792 = vmatprep.subr.bf16.mxu0 %v2067_v0 }
 0x1bd   :  { %v504_v3 = vpop.f32.mrf.mxu1  ;;  %v1932_v28 = vpop.eup %1931 }
 0x1be   :  { %v505_v25 = vadd.f32 %v2512_v8, %v504_v3  ;;  %1717 = vmatmul.mubr.bf16.gmra.mxu0 %v686_v27  ;;  %v2596_v13 = vadd.f32 %v1932_v28, %v2374_v31 }
 0x1bf   :  { %v1638_v40 = vpop.f32.mrf.mxu1  ;;  %1720 = vmatprep.mubr.msk.bf16.mxu0 %vm2068_vm0, %v2067_v0  ;;  %1793 = vmatpush3.bf16.msra.mxu0 %v1913_v39 }
 0x1c0   :  { %1794 = vmatprep.subr.bf16.mxu0 %v2067_v0  ;;  %1939 = vtanh.f32 %v505_v25 }
 0x1c1   :  { %v1934_v44 = vpop.eup %1933  ;;  %v507_v47 = vpop.f32.mrf.mxu1 }
 0x1c2   :  { %v508_v49 = vadd.f32 %v2512_v8, %v507_v47  ;;  %v2599_v15 = vadd.f32 %v1934_v44, %v2379_v33 }
 0x1c3   :  { %v1639_v5 = vpop.f32.mrf.mxu1 }
 0x1c4   :  { %1941 = vtanh.f32 %v508_v49  ;;  %v687_v57 = vpack.c.bf16 %v2599_v15, %v2596_v13 }
 0x1c5   :  { %v512_v60 = vpop.f32.mrf.mxu1  ;;  %v1936_v9 = vpop.eup %1935 }
 0x1c6   :  { %v513_v32 = vadd.f32 %v2512_v8, %v512_v60  ;;  %1721 = vmatmul.mubr.bf16.gmra.mxu0 %v687_v57  ;;  %v2608_v16 = vadd.f32 %v1936_v9, %v2383_v36 }
 0x1c7   :  { %v1642_v18 = vpop.f32.mrf.mxu1  ;;  %1724 = vmatprep.mubr.msk.bf16.mxu0 %vm2068_vm0, %v2067_v0 }
 0x1c8   :  { %1943 = vtanh.f32 %v513_v32 }
 0x1c9   :  { %v1938_v12 = vpop.eup %1937  ;;  %v515_v31 = vpop.f32.mrf.mxu1 }
 0x1ca   :  { %v516_v33 = vadd.f32 %v2512_v8, %v515_v31  ;;  %v2611_v20 = vadd.f32 %v1938_v12, %v2387_v38 }
 0x1cb   :  { %v1643_v17 = vpop.f32.mrf.mxu1 }
 0x1cc   :  { %1945 = vtanh.f32 %v516_v33  ;;  %v688_v21 = vpack.c.bf16 %v2611_v20, %v2608_v16 }
 0x1cd   :  { %v520_v23 = vpop.f32.mrf.mxu1  ;;  %v1940_v27 = vpop.eup %1939 }
 0x1ce   :  { %v521_v10 = vadd.f32 %v2512_v8, %v520_v23  ;;  %1725 = vmatmul.mubr.bf16.gmra.mxu0 %v688_v21  ;;  %v2620_v25 = vadd.f32 %v1940_v27, %v2391_v41 }
 0x1cf   :  { %v1646_v39 = vpop.f32.mrf.mxu1  ;;  %1728 = vmatprep.mubr.msk.bf16.mxu0 %vm2068_vm0, %v2067_v0 }
 0x1d0   :  { %1947 = vtanh.f32 %v521_v10 }
 0x1d1   :  { %v1942_v3 = vpop.eup %1941  ;;  %v523_v36 = vpop.f32.mrf.mxu1 }
 0x1d2   :  { %v524_v38 = vadd.f32 %v2512_v8, %v523_v36  ;;  %v2623_v28 = vadd.f32 %v1942_v3, %v2395_v43 }
 0x1d3   :  { %v1647_v40 = vpop.f32.mrf.mxu1 }
 0x1d4   :  { %1949 = vtanh.f32 %v524_v38  ;;  %v689_v44 = vpack.c.bf16 %v2623_v28, %v2620_v25 }
 0x1d5   :  { %v528_v47 = vpop.f32.mrf.mxu1  ;;  %v1944_v5 = vpop.eup %1943 }
 0x1d6   :  { %v529_v49 = vadd.f32 %v2512_v8, %v528_v47  ;;  %1729 = vmatmul.mubr.bf16.gmra.mxu0 %v689_v44  ;;  %v2632_v32 = vadd.f32 %v1944_v5, %v2399_v46 }
 0x1d7   :  { %v1650_v57 = vpop.f32.mrf.mxu1  ;;  %1732 = vmatprep.mubr.msk.bf16.mxu0 %vm2068_vm0, %v2067_v0 }
 0x1d8   :  { %1951 = vtanh.f32 %v529_v49 }
 0x1d9   :  { %v1946_v60 = vpop.eup %1945  ;;  %v531_v41 = vpop.f32.mrf.mxu1 }
 0x1da   :  { %v532_v43 = vadd.f32 %v2512_v8, %v531_v41  ;;  %v2635_v9 = vadd.f32 %v1946_v60, %v2403_v48 }
 0x1db   :  { %v1651_v18 = vpop.f32.mrf.mxu1 }
 0x1dc   :  { %1953 = vtanh.f32 %v532_v43  ;;  %v690_v12 = vpack.c.bf16 %v2635_v9, %v2632_v32 }
 0x1dd   :  { %v536_v31 = vpop.f32.mrf.mxu1  ;;  %v1948_v17 = vpop.eup %1947 }
 0x1de   :  { %v537_v33 = vadd.f32 %v2512_v8, %v536_v31  ;;  %1733 = vmatmul.mubr.bf16.gmra.mxu0 %v690_v12  ;;  %v2644_v10 = vadd.f32 %v1948_v17, %v2407_v51 }
 0x1df   :  { %v1654_v21 = vpop.f32.mrf.mxu1  ;;  %1736 = vmatprep.mubr.msk.bf16.mxu0 %vm2068_vm0, %v2067_v0 }
 0x1e0   :  { %1955 = vtanh.f32 %v537_v33 }
 0x1e1   :  { %v1950_v23 = vpop.eup %1949  ;;  %v539_v46 = vpop.f32.mrf.mxu1 }
 0x1e2   :  { %v540_v48 = vadd.f32 %v2512_v8, %v539_v46  ;;  %v2647_v27 = vadd.f32 %v1950_v23, %v2411_v53 }
 0x1e3   :  { %v1655_v39 = vpop.f32.mrf.mxu1 }
 0x1e4   :  { %1957 = vtanh.f32 %v540_v48  ;;  %v691_v3 = vpack.c.bf16 %v2647_v27, %v2644_v10 }
 0x1e5   :  { %v544_v36 = vpop.f32.mrf.mxu1  ;;  %v1952_v40 = vpop.eup %1951 }
 0x1e6   :  { %v545_v38 = vadd.f32 %v2512_v8, %v544_v36  ;;  %1737 = vmatmul.mubr.bf16.gmra.mxu0 %v691_v3  ;;  %v2656_v49 = vadd.f32 %v1952_v40, %v2415_v56 }
 0x1e7   :  { %v1658_v44 = vpop.f32.mrf.mxu1  ;;  %1740 = vmatprep.mubr.msk.bf16.mxu0 %vm2068_vm0, %v2067_v0 }
 0x1e8   :  { %1959 = vtanh.f32 %v545_v38  ;;  %v1914_v44 = vld [vmem:[%s3085_s4] sm:$0xff]  }
 0x1e9   :  { %v1954_v47 = vpop.eup %1953  ;;  %v547_v51 = vpop.f32.mrf.mxu1  ;;  %1887 = vmatpush3.bf16.msra.mxu1 %v1914_v44  ;;  %1795 = vmatpush3.bf16.msra.mxu0 %v1914_v44 }
 0x1ea   :  { %v548_v53 = vadd.f32 %v2512_v8, %v547_v51  ;;  %v2659_v5 = vadd.f32 %v1954_v47, %v2419_v58 }
 0x1eb   :  { %v1659_v57 = vpop.f32.mrf.mxu1 }
 0x1ec   :  { %1961 = vtanh.f32 %v548_v53  ;;  %v692_v60 = vpack.c.bf16 %v2659_v5, %v2656_v49 }
 0x1ed   :  { %v552_v41 = vpop.f32.mrf.mxu1  ;;  %v1956_v18 = vpop.eup %1955 }
 0x1ee   :  { %v553_v43 = vadd.f32 %v2512_v8, %v552_v41  ;;  %1741 = vmatmul.mubr.bf16.gmra.mxu0 %v692_v60  ;;  %v2668_v33 = vadd.f32 %v1956_v18, %v2426_v62 }
 0x1ef   :  { %v1662_v12 = vpop.f32.mrf.mxu1  ;;  %1744 = vmatprep.mubr.msk.bf16.mxu0 %vm2068_vm0, %v2067_v0 }
 0x1f0   :  { %1963 = vtanh.f32 %v553_v43 }
 0x1f1   :  { %v1958_v31 = vpop.eup %1957  ;;  %v555_v56 = vpop.f32.mrf.mxu1 }
 0x1f2   :  { %v556_v58 = vadd.f32 %v2512_v8, %v555_v56  ;;  %v2671_v17 = vadd.f32 %v1958_v31, %v2431_v1 }
 0x1f3   :  { %v1663_v21 = vpop.f32.mrf.mxu1 }
 0x1f4   :  { %1965 = vtanh.f32 %v556_v58  ;;  %v693_v23 = vpack.c.bf16 %v2671_v17, %v2668_v33 }
 0x1f5   :  { %v560_v46 = vpop.f32.mrf.mxu1  ;;  %v1960_v39 = vpop.eup %1959 }
 0x1f6   :  { %v561_v48 = vadd.f32 %v2512_v8, %v560_v46  ;;  %1745 = vmatmul.mubr.bf16.gmra.mxu0 %v693_v23  ;;  %v2680_v38 = vadd.f32 %v1960_v39, %v2435_v4 }
 0x1f7   :  { %v1666_v3 = vpop.f32.mrf.mxu1  ;;  %1748 = vmatprep.mubr.msk.bf16.mxu0 %vm2068_vm0, %v2067_v0 }
 0x1f8   :  { %1967 = vtanh.f32 %v561_v48 }
 0x1f9   :  { %v1962_v36 = vpop.eup %1961  ;;  %v563_v62 = vpop.f32.mrf.mxu1 }
 0x1fa   :  { %v564_v1 = vadd.f32 %v2512_v8, %v563_v62  ;;  %v2683_v40 = vadd.f32 %v1962_v36, %v2439_v6 }
 0x1fb   :  { %v1667_v47 = vpop.f32.mrf.mxu1 }
 0x1fc   :  { %1969 = vtanh.f32 %v564_v1  ;;  %v694_v51 = vpack.c.bf16 %v2683_v40, %v2680_v38 }
 0x1fd   :  { %v568_v53 = vpop.f32.mrf.mxu1  ;;  %v1964_v4 = vpop.eup %1963 }
 0x1fe   :  { %v569_v57 = vadd.f32 %v2512_v8, %v568_v53  ;;  %1749 = vmatmul.mubr.bf16.gmra.mxu0 %v694_v51  ;;  %v2695_v18 = vadd.f32 %v1964_v4, %v2443_v11 }
 0x1ff   :  { %v1670_v60 = vpop.f32.mrf.mxu1  ;;  %1752 = vmatprep.mubr.msk.bf16.mxu0 %vm2068_vm0, %v2067_v0 }
 0x200   :  { %1971 = vtanh.f32 %v569_v57 }
 0x201   :  { %v1966_v6 = vpop.eup %1965  ;;  %v571_v41 = vpop.f32.mrf.mxu1 }
 0x202   :  { %v572_v43 = vadd.f32 %v2512_v8, %v571_v41  ;;  %v2698_v12 = vadd.f32 %v1966_v6, %v2447_v14 }
 0x203   :  { %v1671_v31 = vpop.f32.mrf.mxu1 }
 0x204   :  { %1973 = vtanh.f32 %v572_v43  ;;  %v695_v56 = vpack.c.bf16 %v2698_v12, %v2695_v18 }
 0x205   :  { %v576_v58 = vpop.f32.mrf.mxu1  ;;  %v1968_v23 = vpop.eup %1967 }
 0x206   :  { %v577_v21 = vadd.f32 %v2512_v8, %v576_v58  ;;  %1753 = vmatmul.mubr.bf16.gmra.mxu0 %v695_v56  ;;  %v2707_v39 = vadd.f32 %v1968_v23, %v2451_v19 }
 0x207   :  { %v1674_v46 = vpop.f32.mrf.mxu1  ;;  %1756 = vmatprep.mubr.msk.bf16.mxu0 %vm2068_vm0, %v2067_v0 }
 0x208   :  { %1975 = vtanh.f32 %v577_v21 }
 0x209   :  { %v1970_v48 = vpop.eup %1969  ;;  %v579_v11 = vpop.f32.mrf.mxu1 }
 0x20a   :  { %v580_v14 = vadd.f32 %v2512_v8, %v579_v11  ;;  %v2710_v3 = vadd.f32 %v1970_v48, %v2455_v22 }
 0x20b   :  { %v1675_v36 = vpop.f32.mrf.mxu1 }
 0x20c   :  { %1977 = vtanh.f32 %v580_v14  ;;  %v696_v62 = vpack.c.bf16 %v2710_v3, %v2707_v39 }
 0x20d   :  { %v584_v1 = vpop.f32.mrf.mxu1  ;;  %v1972_v47 = vpop.eup %1971 }
 0x20e   :  { %v585_v44 = vadd.f32 %v2512_v8, %v584_v1  ;;  %1757 = vmatmul.mubr.bf16.gmra.mxu0 %v696_v62  ;;  %v2719_v57 = vadd.f32 %v1972_v47, %v2459_v26 }
 0x20f   :  { %v1678_v51 = vpop.f32.mrf.mxu1  ;;  %1760 = vmatprep.mubr.msk.bf16.mxu0 %vm2068_vm0, %v2067_v0 }
 0x210   :  { %1979 = vtanh.f32 %v585_v44 }
 0x211   :  { %v1974_v53 = vpop.eup %1973  ;;  %v587_v19 = vpop.f32.mrf.mxu1 }
 0x212   :  { %v588_v22 = vadd.f32 %v2512_v8, %v587_v19  ;;  %v2722_v4 = vadd.f32 %v1974_v53, %v2463_v29 }
 0x213   :  { %v1679_v60 = vpop.f32.mrf.mxu1 }
 0x214   :  { %1981 = vtanh.f32 %v588_v22  ;;  %v697_v6 = vpack.c.bf16 %v2722_v4, %v2719_v57 }
 0x215   :  { %v592_v41 = vpop.f32.mrf.mxu1  ;;  %v1976_v31 = vpop.eup %1975 }
 0x216   :  { %v593_v43 = vadd.f32 %v2512_v8, %v592_v41  ;;  %1761 = vmatmul.mubr.bf16.gmra.mxu0 %v697_v6  ;;  %v2731_v21 = vadd.f32 %v1976_v31, %v2467_v34 }
 0x217   :  { %v1682_v56 = vpop.f32.mrf.mxu1  ;;  %1764 = vmatprep.mubr.msk.bf16.mxu0 %vm2068_vm0, %v2067_v0 }
 0x218   :  { %1983 = vtanh.f32 %v593_v43 }
 0x219   :  { %v1978_v58 = vpop.eup %1977  ;;  %v595_v26 = vpop.f32.mrf.mxu1 }
 0x21a   :  { %v596_v29 = vadd.f32 %v2512_v8, %v595_v26  ;;  %v2734_v23 = vadd.f32 %v1978_v58, %v2471_v37 }
 0x21b   :  { %v1683_v46 = vpop.f32.mrf.mxu1 }
 0x21c   :  { %1985 = vtanh.f32 %v596_v29  ;;  %v698_v48 = vpack.c.bf16 %v2734_v23, %v2731_v21 }
 0x21d   :  { %v600_v11 = vpop.f32.mrf.mxu1  ;;  %v1980_v36 = vpop.eup %1979 }
 0x21e   :  { %v601_v14 = vadd.f32 %v2512_v8, %v600_v11  ;;  %1765 = vmatmul.mubr.bf16.gmra.mxu0 %v698_v48  ;;  %v2743_v44 = vadd.f32 %v1980_v36, %v2475_v42 }
 0x21f   :  { %v1686_v62 = vpop.f32.mrf.mxu1  ;;  %1768 = vmatprep.mubr.msk.bf16.mxu0 %vm2068_vm0, %v2067_v0 }
 0x220   :  { %1987 = vtanh.f32 %v601_v14 }
 0x221   :  { %v1982_v1 = vpop.eup %1981  ;;  %v603_v34 = vpop.f32.mrf.mxu1 }
 0x222   :  { %v604_v37 = vadd.f32 %v2512_v8, %v603_v34  ;;  %v2746_v47 = vadd.f32 %v1982_v1, %v2479_v45 }
 0x223   :  { %v1687_v51 = vpop.f32.mrf.mxu1 }
 0x224   :  { %1989 = vtanh.f32 %v604_v37  ;;  %v699_v53 = vpack.c.bf16 %v2746_v47, %v2743_v44 }
 0x225   :  { %v1984_v19 = vpop.eup %1983 }
 0x226   :  { %1769 = vmatmul.mubr.bf16.gmra.mxu0 %v699_v53  ;;  %v2753_v60 = vadd.f32 %v1984_v19, %v2483_v50 }
 0x227   :  { %1772 = vmatprep.mubr.msk.bf16.mxu0 %vm2068_vm0, %v2067_v0 }
 0x229   :  { %v1986_v22 = vpop.eup %1985 }
 0x22a   :  { %v2756_v42 = vadd.f32 %v1986_v22, %v2487_v54  ;;  %v2775_v54 = vld [vmem:[%s3086_s3 + $0x1] ss:$0 sm:$0xff] }
 0x22c   :  { %v700_v45 = vpack.c.bf16 %v2756_v42, %v2753_v60 }
 0x22d   :  { %v1988_v8 = vpop.eup %1987 }
 0x22e   :  { %1773 = vmatmul.mubr.bf16.gmra.mxu0 %v700_v45  ;;  %v2763_v41 = vadd.f32 %v1988_v8, %v2491_v59 }
 0x22f   :  { %1776 = vmatprep.mubr.msk.bf16.mxu0 %vm2068_vm0, %v2067_v0 }
 0x231   :  { %v1990_v6 = vpop.eup %1989 }
 0x232   :  { %v2766_v43 = vadd.f32 %v1990_v6, %v2495_v61 }
 0x234   :  { %v701_v50 = vpack.c.bf16 %v2766_v43, %v2763_v41 }
 0x236   :  { %1777 = vmatmul.mubr.bf16.gmra.mxu0 %v701_v50 }
 0x237   :  { %1796 = vmatprep.mubr.msk.bf16.mxu0 %vm2068_vm0, %v2067_v0 }
 0x266   :  { %v809_v31 = vpop.f32.mrf.mxu0 }
 0x267   :  { %v810_v56 = vadd.f32 %v2775_v54, %v809_v31 }
 0x268   :  { %v1706_v59 = vpop.f32.mrf.mxu0 }
 0x269   :  { %1991 = vtanh.f32 %v810_v56 }
 0x26a   :  { %v812_v58 = vpop.f32.mrf.mxu0 }
 0x26b   :  { %v813_v61 = vadd.f32 %v2775_v54, %v812_v58 }
 0x26c   :  { %v1707_v26 = vpop.f32.mrf.mxu0 }
 0x26d   :  { %1993 = vtanh.f32 %v813_v61 }
 0x26e   :  { %v817_v29 = vpop.f32.mrf.mxu0 }
 0x26f   :  { %v818_v46 = vadd.f32 %v2775_v54, %v817_v29 }
 0x270   :  { %v1710_v48 = vpop.f32.mrf.mxu0 }
 0x271   :  { %1995 = vtanh.f32 %v818_v46 }
 0x272   :  { %v820_v11 = vpop.f32.mrf.mxu0 }
 0x273   :  { %v821_v14 = vadd.f32 %v2775_v54, %v820_v11 }
 0x274   :  { %v1711_v36 = vpop.f32.mrf.mxu0 }
 0x275   :  { %1997 = vtanh.f32 %v821_v14 }
 0x276   :  { %v825_v62 = vpop.f32.mrf.mxu0  ;;  %v1992_v34 = vpop.eup %1991 }
 0x277   :  { %v826_v1 = vadd.f32 %v2775_v54, %v825_v62  ;;  %v998_v19 = vadd.f32 %v1992_v34, %v2525_v63 }
 0x278   :  { %v1714_v37 = vpop.f32.mrf.mxu0 }
 0x279   :  { %1999 = vtanh.f32 %v826_v1 }
 0x27a   :  { %v1994_v51 = vpop.eup %1993  ;;  %v828_v53 = vpop.f32.mrf.mxu0 }
 0x27b   :  { %v999_v22 = vadd.f32 %v1994_v51, %v2528_v2  ;;  %v829_v45 = vadd.f32 %v2775_v54, %v828_v53 }
 0x27c   :  { %v1715_v8 = vpop.f32.mrf.mxu0 }
 0x27d   :  { %v1036_v6 = vpack.c.bf16 %v999_v22, %v998_v19  ;;  %2001 = vtanh.f32 %v829_v45 }
 0x27e   :  { %v833_v50 = vpop.f32.mrf.mxu0  ;;  %v1996_v56 = vpop.eup %1995 }
 0x27f   :  { %v834_v31 = vadd.f32 %v2775_v54, %v833_v50  ;;  %1797 = vmatmul.mubr.bf16.vlgmr.msra.gmra.mxu0 %v1036_v6  ;;  %v1000_v63 = vadd.f32 %v1996_v56, %v2542_v30 }
 0x280   :  { %v1718_v59 = vpop.f32.mrf.mxu0 }
 0x281   :  { %2003 = vtanh.f32 %v834_v31 }
 0x282   :  { %v1998_v58 = vpop.eup %1997  ;;  %v836_v61 = vpop.f32.mrf.mxu0 }
 0x283   :  { %v837_v26 = vadd.f32 %v2775_v54, %v836_v61  ;;  %v1001_v2 = vadd.f32 %v1998_v58, %v2545_v35 }
 0x284   :  { %v1719_v29 = vpop.f32.mrf.mxu0 }
 0x285   :  { %2005 = vtanh.f32 %v837_v26  ;;  %v1037_v46 = vpack.c.bf16 %v1001_v2, %v1000_v63 }
 0x286   :  { %v841_v48 = vpop.f32.mrf.mxu0  ;;  %v2000_v14 = vpop.eup %1999 }
 0x287   :  { %v842_v11 = vadd.f32 %v2775_v54, %v841_v48  ;;  %1801 = vmatmul.mubr.bf16.vlgmr.msra.gmra.mxu1 %v1037_v46  ;;  %v1002_v30 = vadd.f32 %v2000_v14, %v2556_v52 }
 0x288   :  { %v1722_v36 = vpop.f32.mrf.mxu0  ;;  %1804 = vmatprep.mubr.msk.bf16.mxu1 %vm2068_vm0, %v2067_v0 }
 0x289   :  { %2007 = vtanh.f32 %v842_v11 }
 0x28a   :  { %v2002_v62 = vpop.eup %2001  ;;  %v844_v1 = vpop.f32.mrf.mxu0 }
 0x28b   :  { %v845_v34 = vadd.f32 %v2775_v54, %v844_v1  ;;  %v1003_v35 = vadd.f32 %v2002_v62, %v2559_v55 }
 0x28c   :  { %v1723_v37 = vpop.f32.mrf.mxu0 }
 0x28d   :  { %2009 = vtanh.f32 %v845_v34  ;;  %v1038_v51 = vpack.c.bf16 %v1003_v35, %v1002_v30 }
 0x28e   :  { %v849_v53 = vpop.f32.mrf.mxu0  ;;  %v2004_v22 = vpop.eup %2003 }
 0x28f   :  { %v850_v19 = vadd.f32 %v2775_v54, %v849_v53  ;;  %1805 = vmatmul.mubr.bf16.gmra.mxu1 %v1038_v51  ;;  %v1004_v52 = vadd.f32 %v2004_v22, %v2577_v24 }
 0x290   :  { %v1726_v45 = vpop.f32.mrf.mxu0  ;;  %1808 = vmatprep.mubr.msk.bf16.mxu1 %vm2068_vm0, %v2067_v0 }
 0x291   :  { %2011 = vtanh.f32 %v850_v19 }
 0x292   :  { %v2006_v8 = vpop.eup %2005  ;;  %v852_v6 = vpop.f32.mrf.mxu0 }
 0x293   :  { %v853_v50 = vadd.f32 %v2775_v54, %v852_v6  ;;  %v1005_v55 = vadd.f32 %v2006_v8, %v2580_v7 }
 0x294   :  { %v1727_v31 = vpop.f32.mrf.mxu0 }
 0x295   :  { %2013 = vtanh.f32 %v853_v50  ;;  %v1039_v56 = vpack.c.bf16 %v1005_v55, %v1004_v52 }
 0x296   :  { %v857_v59 = vpop.f32.mrf.mxu0  ;;  %v2008_v61 = vpop.eup %2007 }
 0x297   :  { %v858_v58 = vadd.f32 %v2775_v54, %v857_v59  ;;  %1809 = vmatmul.mubr.bf16.gmra.mxu1 %v1039_v56  ;;  %v1006_v24 = vadd.f32 %v2008_v61, %v2596_v13 }
 0x298   :  { %v1730_v26 = vpop.f32.mrf.mxu0  ;;  %1812 = vmatprep.mubr.msk.bf16.mxu1 %vm2068_vm0, %v2067_v0 }
 0x299   :  { %2015 = vtanh.f32 %v858_v58 }
 0x29a   :  { %v2010_v63 = vpop.eup %2009  ;;  %v860_v2 = vpop.f32.mrf.mxu0 }
 0x29b   :  { %v861_v29 = vadd.f32 %v2775_v54, %v860_v2  ;;  %v1007_v7 = vadd.f32 %v2010_v63, %v2599_v15 }
 0x29c   :  { %v1731_v46 = vpop.f32.mrf.mxu0 }
 0x29d   :  { %2017 = vtanh.f32 %v861_v29  ;;  %v1040_v48 = vpack.c.bf16 %v1007_v7, %v1006_v24 }
 0x29e   :  { %v865_v11 = vpop.f32.mrf.mxu0  ;;  %v2012_v36 = vpop.eup %2011 }
 0x29f   :  { %v866_v14 = vadd.f32 %v2775_v54, %v865_v11  ;;  %1813 = vmatmul.mubr.bf16.gmra.mxu1 %v1040_v48  ;;  %v1008_v13 = vadd.f32 %v2012_v36, %v2608_v16 }
 0x2a0   :  { %v1734_v62 = vpop.f32.mrf.mxu0  ;;  %1816 = vmatprep.mubr.msk.bf16.mxu1 %vm2068_vm0, %v2067_v0 }
 0x2a1   :  { %2019 = vtanh.f32 %v866_v14 }
 0x2a2   :  { %v2014_v1 = vpop.eup %2013  ;;  %v868_v34 = vpop.f32.mrf.mxu0 }
 0x2a3   :  { %v869_v30 = vadd.f32 %v2775_v54, %v868_v34  ;;  %v1009_v15 = vadd.f32 %v2014_v1, %v2611_v20 }
 0x2a4   :  { %v1735_v35 = vpop.f32.mrf.mxu0 }
 0x2a5   :  { %2021 = vtanh.f32 %v869_v30  ;;  %v1041_v37 = vpack.c.bf16 %v1009_v15, %v1008_v13 }
 0x2a6   :  { %v873_v51 = vpop.f32.mrf.mxu0  ;;  %v2016_v19 = vpop.eup %2015 }
 0x2a7   :  { %v874_v53 = vadd.f32 %v2775_v54, %v873_v51  ;;  %1817 = vmatmul.mubr.bf16.gmra.mxu1 %v1041_v37  ;;  %v1010_v16 = vadd.f32 %v2016_v19, %v2620_v25 }
 0x2a8   :  { %v1738_v22 = vpop.f32.mrf.mxu0  ;;  %1820 = vmatprep.mubr.msk.bf16.mxu1 %vm2068_vm0, %v2067_v0 }
 0x2a9   :  { %2023 = vtanh.f32 %v874_v53 }
 0x2aa   :  { %v2018_v45 = vpop.eup %2017  ;;  %v876_v8 = vpop.f32.mrf.mxu0 }
 0x2ab   :  { %v877_v6 = vadd.f32 %v2775_v54, %v876_v8  ;;  %v1011_v20 = vadd.f32 %v2018_v45, %v2623_v28 }
 0x2ac   :  { %v1739_v50 = vpop.f32.mrf.mxu0 }
 0x2ad   :  { %2025 = vtanh.f32 %v877_v6  ;;  %v1042_v52 = vpack.c.bf16 %v1011_v20, %v1010_v16 }
 0x2ae   :  { %v881_v55 = vpop.f32.mrf.mxu0  ;;  %v2020_v56 = vpop.eup %2019 }
 0x2af   :  { %v882_v31 = vadd.f32 %v2775_v54, %v881_v55  ;;  %1821 = vmatmul.mubr.bf16.gmra.mxu1 %v1042_v52  ;;  %v1012_v25 = vadd.f32 %v2020_v56, %v2632_v32 }
 0x2b0   :  { %v1742_v59 = vpop.f32.mrf.mxu0  ;;  %1824 = vmatprep.mubr.msk.bf16.mxu1 %vm2068_vm0, %v2067_v0 }
 0x2b1   :  { %2027 = vtanh.f32 %v882_v31 }
 0x2b2   :  { %v2022_v58 = vpop.eup %2021  ;;  %v884_v61 = vpop.f32.mrf.mxu0 }
 0x2b3   :  { %v885_v26 = vadd.f32 %v2775_v54, %v884_v61  ;;  %v1013_v28 = vadd.f32 %v2022_v58, %v2635_v9 }
 0x2b4   :  { %v1743_v63 = vpop.f32.mrf.mxu0 }
 0x2b5   :  { %2029 = vtanh.f32 %v885_v26  ;;  %v1043_v2 = vpack.c.bf16 %v1013_v28, %v1012_v25 }
 0x2b6   :  { %v889_v29 = vpop.f32.mrf.mxu0  ;;  %v2024_v7 = vpop.eup %2023 }
 0x2b7   :  { %v890_v24 = vadd.f32 %v2775_v54, %v889_v29  ;;  %1825 = vmatmul.mubr.bf16.gmra.mxu1 %v1043_v2  ;;  %v1014_v32 = vadd.f32 %v2024_v7, %v2644_v10 }
 0x2b8   :  { %v1746_v46 = vpop.f32.mrf.mxu0  ;;  %1828 = vmatprep.mubr.msk.bf16.mxu1 %vm2068_vm0, %v2067_v0 }
 0x2b9   :  { %2031 = vtanh.f32 %v890_v24 }
 0x2ba   :  { %v2026_v48 = vpop.eup %2025  ;;  %v892_v11 = vpop.f32.mrf.mxu0 }
 0x2bb   :  { %v893_v14 = vadd.f32 %v2775_v54, %v892_v11  ;;  %v1015_v9 = vadd.f32 %v2026_v48, %v2647_v27 }
 0x2bc   :  { %v1747_v36 = vpop.f32.mrf.mxu0 }
 0x2bd   :  { %2033 = vtanh.f32 %v893_v14  ;;  %v1044_v62 = vpack.c.bf16 %v1015_v9, %v1014_v32 }
 0x2be   :  { %v897_v1 = vpop.f32.mrf.mxu0  ;;  %v2028_v30 = vpop.eup %2027 }
 0x2bf   :  { %v898_v34 = vadd.f32 %v2775_v54, %v897_v1  ;;  %1829 = vmatmul.mubr.bf16.gmra.mxu1 %v1044_v62  ;;  %v1016_v10 = vadd.f32 %v2028_v30, %v2656_v49 }
 0x2c0   :  { %v1750_v13 = vpop.f32.mrf.mxu0  ;;  %1832 = vmatprep.mubr.msk.bf16.mxu1 %vm2068_vm0, %v2067_v0 }
 0x2c1   :  { %2035 = vtanh.f32 %v898_v34 }
 0x2c2   :  { %v2030_v15 = vpop.eup %2029  ;;  %v900_v35 = vpop.f32.mrf.mxu0 }
 0x2c3   :  { %v901_v37 = vadd.f32 %v2775_v54, %v900_v35  ;;  %v1017_v27 = vadd.f32 %v2030_v15, %v2659_v5 }
 0x2c4   :  { %v1751_v51 = vpop.f32.mrf.mxu0 }
 0x2c5   :  { %2037 = vtanh.f32 %v901_v37  ;;  %v1045_v53 = vpack.c.bf16 %v1017_v27, %v1016_v10 }
 0x2c6   :  { %v905_v19 = vpop.f32.mrf.mxu0  ;;  %v2032_v45 = vpop.eup %2031 }
 0x2c7   :  { %v906_v22 = vadd.f32 %v2775_v54, %v905_v19  ;;  %1833 = vmatmul.mubr.bf16.gmra.mxu1 %v1045_v53  ;;  %v1018_v49 = vadd.f32 %v2032_v45, %v2668_v33 }
 0x2c8   :  { %v1754_v8 = vpop.f32.mrf.mxu0  ;;  %1836 = vmatprep.mubr.msk.bf16.mxu1 %vm2068_vm0, %v2067_v0 }
 0x2c9   :  { %2039 = vtanh.f32 %v906_v22 }
 0x2ca   :  { %v2034_v6 = vpop.eup %2033  ;;  %v908_v16 = vpop.f32.mrf.mxu0 }
 0x2cb   :  { %v909_v20 = vadd.f32 %v2775_v54, %v908_v16  ;;  %v1019_v5 = vadd.f32 %v2034_v6, %v2671_v17 }
 0x2cc   :  { %v1755_v50 = vpop.f32.mrf.mxu0 }
 0x2cd   :  { %2041 = vtanh.f32 %v909_v20  ;;  %v1046_v52 = vpack.c.bf16 %v1019_v5, %v1018_v49 }
 0x2ce   :  { %v913_v55 = vpop.f32.mrf.mxu0  ;;  %v2036_v56 = vpop.eup %2035 }
 0x2cf   :  { %v914_v31 = vadd.f32 %v2775_v54, %v913_v55  ;;  %1837 = vmatmul.mubr.bf16.gmra.mxu1 %v1046_v52  ;;  %v1020_v33 = vadd.f32 %v2036_v56, %v2680_v38 }
 0x2d0   :  { %v1758_v59 = vpop.f32.mrf.mxu0  ;;  %1840 = vmatprep.mubr.msk.bf16.mxu1 %vm2068_vm0, %v2067_v0 }
 0x2d1   :  { %2043 = vtanh.f32 %v914_v31 }
 0x2d2   :  { %v2038_v58 = vpop.eup %2037  ;;  %v916_v61 = vpop.f32.mrf.mxu0 }
 0x2d3   :  { %v917_v26 = vadd.f32 %v2775_v54, %v916_v61  ;;  %v1021_v17 = vadd.f32 %v2038_v58, %v2683_v40 }
 0x2d4   :  { %v1759_v25 = vpop.f32.mrf.mxu0 }
 0x2d5   :  { %2045 = vtanh.f32 %v917_v26  ;;  %v1047_v28 = vpack.c.bf16 %v1021_v17, %v1020_v33 }
 0x2d6   :  { %v921_v63 = vpop.f32.mrf.mxu0  ;;  %v2040_v29 = vpop.eup %2039 }
 0x2d7   :  { %v922_v2 = vadd.f32 %v2775_v54, %v921_v63  ;;  %1841 = vmatmul.mubr.bf16.gmra.mxu1 %v1047_v28  ;;  %v1022_v38 = vadd.f32 %v2040_v29, %v2695_v18 }
 0x2d8   :  { %v1762_v24 = vpop.f32.mrf.mxu0  ;;  %1844 = vmatprep.mubr.msk.bf16.mxu1 %vm2068_vm0, %v2067_v0 }
 0x2d9   :  { %2047 = vtanh.f32 %v922_v2 }
 0x2da   :  { %v2042_v7 = vpop.eup %2041  ;;  %v924_v46 = vpop.f32.mrf.mxu0 }
 0x2db   :  { %v925_v48 = vadd.f32 %v2775_v54, %v924_v46  ;;  %v1023_v40 = vadd.f32 %v2042_v7, %v2698_v12 }
 0x2dc   :  { %v1763_v11 = vpop.f32.mrf.mxu0 }
 0x2dd   :  { %2049 = vtanh.f32 %v925_v48  ;;  %v1048_v14 = vpack.c.bf16 %v1023_v40, %v1022_v38  ;;  %v2890_v48 = vld [vmem:[%s3087_s5] ss:$0 sm:$0xff] }
 0x2de   :  { %v929_v32 = vpop.f32.mrf.mxu0  ;;  %v2044_v36 = vpop.eup %2043 }
 0x2df   :  { %v930_v9 = vadd.f32 %v2775_v54, %v929_v32  ;;  %1845 = vmatmul.mubr.bf16.gmra.mxu1 %v1048_v14  ;;  %v1024_v18 = vadd.f32 %v2044_v36, %v2707_v39 }
 0x2e0   :  { %v1766_v62 = vpop.f32.mrf.mxu0  ;;  %1848 = vmatprep.mubr.msk.bf16.mxu1 %vm2068_vm0, %v2067_v0 }
 0x2e1   :  { %2051 = vtanh.f32 %v930_v9 }
 0x2e2   :  { %v2046_v1 = vpop.eup %2045  ;;  %v932_v34 = vpop.f32.mrf.mxu0 }
 0x2e3   :  { %v933_v30 = vadd.f32 %v2775_v54, %v932_v34  ;;  %v1025_v12 = vadd.f32 %v2046_v1, %v2710_v3 }
 0x2e4   :  { %v1767_v13 = vpop.f32.mrf.mxu0 }
 0x2e5   :  { %2053 = vtanh.f32 %v933_v30  ;;  %v1049_v15 = vpack.c.bf16 %v1025_v12, %v1024_v18 }
 0x2e6   :  { %v937_v35 = vpop.f32.mrf.mxu0  ;;  %v2048_v10 = vpop.eup %2047 }
 0x2e7   :  { %v938_v37 = vadd.f32 %v2775_v54, %v937_v35  ;;  %1849 = vmatmul.mubr.bf16.gmra.mxu1 %v1049_v15  ;;  %v1026_v39 = vadd.f32 %v2048_v10, %v2719_v57 }
 0x2e8   :  { %v1770_v27 = vpop.f32.mrf.mxu0  ;;  %1852 = vmatprep.mubr.msk.bf16.mxu1 %vm2068_vm0, %v2067_v0 }
 0x2e9   :  { %2055 = vtanh.f32 %v938_v37 }
 0x2ea   :  { %v2050_v51 = vpop.eup %2049  ;;  %v940_v53 = vpop.f32.mrf.mxu0 }
 0x2eb   :  { %v941_v19 = vadd.f32 %v2775_v54, %v940_v53  ;;  %v1027_v3 = vadd.f32 %v2050_v51, %v2722_v4 }
 0x2ec   :  { %v1771_v22 = vpop.f32.mrf.mxu0 }
 0x2ed   :  { %2057 = vtanh.f32 %v941_v19  ;;  %v1050_v45 = vpack.c.bf16 %v1027_v3, %v1026_v39 }
 0x2ee   :  { %v945_v8 = vpop.f32.mrf.mxu0  ;;  %v2052_v16 = vpop.eup %2051 }
 0x2ef   :  { %v946_v6 = vadd.f32 %v2775_v54, %v945_v8  ;;  %1853 = vmatmul.mubr.bf16.gmra.mxu1 %v1050_v45  ;;  %v1028_v57 = vadd.f32 %v2052_v16, %v2731_v21 }
 0x2f0   :  { %v1774_v20 = vpop.f32.mrf.mxu0  ;;  %1856 = vmatprep.mubr.msk.bf16.mxu1 %vm2068_vm0, %v2067_v0 }
 0x2f1   :  { %2059 = vtanh.f32 %v946_v6 }
 0x2f2   :  { %v2054_v49 = vpop.eup %2053  ;;  %v948_v5 = vpop.f32.mrf.mxu0 }
 0x2f3   :  { %v949_v50 = vadd.f32 %v2775_v54, %v948_v5  ;;  %v1029_v4 = vadd.f32 %v2054_v49, %v2734_v23 }
 0x2f4   :  { %v1775_v52 = vpop.f32.mrf.mxu0 }
 0x2f5   :  { %2061 = vtanh.f32 %v949_v50  ;;  %v1051_v55 = vpack.c.bf16 %v1029_v4, %v1028_v57 }
 0x2f6   :  { %v953_v31 = vpop.f32.mrf.mxu0  ;;  %v2056_v59 = vpop.eup %2055 }
 0x2f7   :  { %v954_v56 = vadd.f32 %v2775_v54, %v953_v31  ;;  %1857 = vmatmul.mubr.bf16.gmra.mxu1 %v1051_v55  ;;  %v1030_v21 = vadd.f32 %v2056_v59, %v2743_v44 }
 0x2f8   :  { %v1778_v58 = vpop.f32.mrf.mxu0  ;;  %1860 = vmatprep.mubr.msk.bf16.mxu1 %vm2068_vm0, %v2067_v0 }
 0x2f9   :  { %2063 = vtanh.f32 %v954_v56 }
 0x2fa   :  { %v2058_v61 = vpop.eup %2057  ;;  %v956_v26 = vpop.f32.mrf.mxu0 }
 0x2fb   :  { %v957_v33 = vadd.f32 %v2775_v54, %v956_v26  ;;  %v1031_v23 = vadd.f32 %v2058_v61, %v2746_v47 }
 0x2fc   :  { %v1779_v17 = vpop.f32.mrf.mxu0 }
 0x2fd   :  { %2065 = vtanh.f32 %v957_v33  ;;  %v1052_v25 = vpack.c.bf16 %v1031_v23, %v1030_v21 }
 0x2fe   :  { %v2060_v28 = vpop.eup %2059 }
 0x2ff   :  { %1861 = vmatmul.mubr.bf16.gmra.mxu1 %v1052_v25  ;;  %v1032_v2 = vadd.f32 %v2060_v28, %v2753_v60 }
 0x300   :  { %1864 = vmatprep.mubr.msk.bf16.mxu1 %vm2068_vm0, %v2067_v0 }
 0x302   :  { %v2062_v63 = vpop.eup %2061 }
 0x303   :  { %v1033_v29 = vadd.f32 %v2062_v63, %v2756_v42 }
 0x305   :  { %v1053_v24 = vpack.c.bf16 %v1033_v29, %v1032_v2 }
 0x306   :  { %v2064_v54 = vpop.eup %2063 }
 0x307   :  { %1865 = vmatmul.mubr.bf16.gmra.mxu1 %v1053_v24  ;;  %v1034_v47 = vadd.f32 %v2064_v54, %v2763_v41 }
 0x308   :  { %1868 = vmatprep.mubr.msk.bf16.mxu1 %vm2068_vm0, %v2067_v0 }
 0x30a   :  { %v2066_v44 = vpop.eup %2065 }
 0x30b   :  { %v1035_v7 = vadd.f32 %v2066_v44, %v2766_v43 }
 0x30d   :  { %v1054_v46 = vpack.c.bf16 %v1035_v7, %v1034_v47 }
 0x30f   :  { %1869 = vmatmul.mubr.bf16.gmra.mxu1 %v1054_v46 }
 0x33f   :  { %v1160_v60 = vpop.f32.mrf.mxu0 }
 0x340   :  { %v1161_v42 = vadd.f32 %v2890_v48, %v1160_v60 }
 0x341   :  { %v1798_v38 = vpop.f32.mrf.mxu0 }
 0x342   :  { %1311 = vst.msk [vmem:[%s3088_s6] sm:$0xff] %vm89_vm1, %v1161_v42 }
 0x343   :  { %v1163_v0 = vpop.f32.mrf.mxu0 }
 0x344   :  { %v1164_v41 = vadd.f32 %v2890_v48, %v1163_v0 }
 0x345   :  { %v1799_v43 = vpop.f32.mrf.mxu0 }
 0x346   :  { %1312 = vst.msk [vmem:[%s3088_s6 + $0x8] sm:$0xff] %vm89_vm1, %v1164_v41 }
 0x347   :  { %v1168_v40 = vpop.f32.mrf.mxu1 }
 0x348   :  { %v1169_v11 = vadd.f32 %v2890_v48, %v1168_v40 }
 0x349   :  { %v1802_v14 = vpop.f32.mrf.mxu1 }
 0x34a   :  { %1313 = vst.msk [vmem:[%s3088_s6 + $0x10] sm:$0xff] %vm89_vm1, %v1169_v11 }
 0x34b   :  { %v1171_v32 = vpop.f32.mrf.mxu1 }
 0x34c   :  { %v1172_v9 = vadd.f32 %v2890_v48, %v1171_v32 }
 0x34d   :  { %v1803_v36 = vpop.f32.mrf.mxu1 }
 0x34e   :  { %1314 = vst.msk [vmem:[%s3088_s6 + $0x18] sm:$0xff] %vm89_vm1, %v1172_v9 }
 0x34f   :  { %v1176_v62 = vpop.f32.mrf.mxu1 }
 0x350   :  { %v1177_v1 = vadd.f32 %v2890_v48, %v1176_v62 }
 0x351   :  { %v1806_v34 = vpop.f32.mrf.mxu1 }
 0x352   :  { %1315 = vst.msk [vmem:[%s3088_s6 + $0x20] sm:$0xff] %vm89_vm1, %v1177_v1 }
 0x353   :  { %v1179_v30 = vpop.f32.mrf.mxu1 }
 0x354   :  { %v1180_v18 = vadd.f32 %v2890_v48, %v1179_v30 }
 0x355   :  { %v1807_v12 = vpop.f32.mrf.mxu1 }
 0x356   :  { %1316 = vst.msk [vmem:[%s3088_s6 + $0x28] sm:$0xff] %vm89_vm1, %v1180_v18 }
 0x357   :  { %v1184_v13 = vpop.f32.mrf.mxu1 }
 0x358   :  { %v1185_v15 = vadd.f32 %v2890_v48, %v1184_v13 }
 0x359   :  { %v1810_v35 = vpop.f32.mrf.mxu1 }
 0x35a   :  { %1317 = vst.msk [vmem:[%s3088_s6 + $0x30] sm:$0xff] %vm89_vm1, %v1185_v15 }
 0x35b   :  { %v1187_v37 = vpop.f32.mrf.mxu1 }
 0x35c   :  { %v1188_v10 = vadd.f32 %v2890_v48, %v1187_v37 }
 0x35d   :  { %v1811_v27 = vpop.f32.mrf.mxu1 }
 0x35e   :  { %1318 = vst.msk [vmem:[%s3088_s6 + $0x38] sm:$0xff] %vm89_vm1, %v1188_v10 }
 0x35f   :  { %v1192_v51 = vpop.f32.mrf.mxu1 }
 0x360   :  { %v1193_v53 = vadd.f32 %v2890_v48, %v1192_v51 }
 0x361   :  { %v1814_v19 = vpop.f32.mrf.mxu1 }
 0x362   :  { %1319 = vst.msk [vmem:[%s3088_s6 + $0x40] sm:$0xff] %vm89_vm1, %v1193_v53 }
 0x363   :  { %v1195_v39 = vpop.f32.mrf.mxu1 }
 0x364   :  { %v1196_v3 = vadd.f32 %v2890_v48, %v1195_v39 }
 0x365   :  { %v1815_v22 = vpop.f32.mrf.mxu1 }
 0x366   :  { %1320 = vst.msk [vmem:[%s3088_s6 + $0x48] sm:$0xff] %vm89_vm1, %v1196_v3 }
 0x367   :  { %v1200_v45 = vpop.f32.mrf.mxu1 }
 0x368   :  { %v1201_v8 = vadd.f32 %v2890_v48, %v1200_v45 }
 0x369   :  { %v1818_v6 = vpop.f32.mrf.mxu1 }
 0x36a   :  { %1321 = vst.msk [vmem:[%s3088_s6 + $0x50] sm:$0xff] %vm89_vm1, %v1201_v8 }
 0x36b   :  { %v1203_v16 = vpop.f32.mrf.mxu1 }
 0x36c   :  { %v1204_v20 = vadd.f32 %v2890_v48, %v1203_v16 }
 0x36d   :  { %v1819_v49 = vpop.f32.mrf.mxu1 }
 0x36e   :  { %1322 = vst.msk [vmem:[%s3088_s6 + $0x58] sm:$0xff] %vm89_vm1, %v1204_v20 }
 0x36f   :  { %v1208_v5 = vpop.f32.mrf.mxu1 }
 0x370   :  { %v1209_v50 = vadd.f32 %v2890_v48, %v1208_v5 }
 0x371   :  { %v1822_v57 = vpop.f32.mrf.mxu1 }
 0x372   :  { %1323 = vst.msk [vmem:[%s3088_s6 + $0x60] sm:$0xff] %vm89_vm1, %v1209_v50 }
 0x373   :  { %v1211_v4 = vpop.f32.mrf.mxu1 }
 0x374   :  { %v1212_v52 = vadd.f32 %v2890_v48, %v1211_v4 }
 0x375   :  { %v1823_v55 = vpop.f32.mrf.mxu1 }
 0x376   :  { %1324 = vst.msk [vmem:[%s3088_s6 + $0x68] sm:$0xff] %vm89_vm1, %v1212_v52 }
 0x377   :  { %v1216_v31 = vpop.f32.mrf.mxu1 }
 0x378   :  { %v1217_v56 = vadd.f32 %v2890_v48, %v1216_v31 }
 0x379   :  { %v1826_v59 = vpop.f32.mrf.mxu1 }
 0x37a   :  { %1325 = vst.msk [vmem:[%s3088_s6 + $0x70] sm:$0xff] %vm89_vm1, %v1217_v56 }
 0x37b   :  { %v1219_v58 = vpop.f32.mrf.mxu1 }
 0x37c   :  { %v1220_v61 = vadd.f32 %v2890_v48, %v1219_v58 }
 0x37d   :  { %v1827_v26 = vpop.f32.mrf.mxu1 }
 0x37e   :  { %1326 = vst.msk [vmem:[%s3088_s6 + $0x78] sm:$0xff] %vm89_vm1, %v1220_v61 }
 0x37f   :  { %v1224_v33 = vpop.f32.mrf.mxu1 }
 0x380   :  { %v1225_v21 = vadd.f32 %v2890_v48, %v1224_v33 }
 0x381   :  { %v1830_v23 = vpop.f32.mrf.mxu1 }
 0x382   :  { %1327 = vst.msk [vmem:[%s3088_s6 + $0x80] sm:$0xff] %vm89_vm1, %v1225_v21 }
 0x383   :  { %v1227_v17 = vpop.f32.mrf.mxu1 }
 0x384   :  { %v1228_v25 = vadd.f32 %v2890_v48, %v1227_v17 }
 0x385   :  { %v1831_v28 = vpop.f32.mrf.mxu1 }
 0x386   :  { %1328 = vst.msk [vmem:[%s3088_s6 + $0x88] sm:$0xff] %vm89_vm1, %v1228_v25 }
 0x387   :  { %v1232_v63 = vpop.f32.mrf.mxu1 }
 0x388   :  { %v1233_v2 = vadd.f32 %v2890_v48, %v1232_v63 }
 0x389   :  { %v1834_v29 = vpop.f32.mrf.mxu1 }
 0x38a   :  { %1329 = vst.msk [vmem:[%s3088_s6 + $0x90] sm:$0xff] %vm89_vm1, %v1233_v2 }
 0x38b   :  { %v1235_v24 = vpop.f32.mrf.mxu1 }
 0x38c   :  { %v1236_v54 = vadd.f32 %v2890_v48, %v1235_v24 }
 0x38d   :  { %v1835_v44 = vpop.f32.mrf.mxu1 }
 0x38e   :  { %1330 = vst.msk [vmem:[%s3088_s6 + $0x98] sm:$0xff] %vm89_vm1, %v1236_v54 }
 0x38f   :  { %v1240_v47 = vpop.f32.mrf.mxu1 }
 0x390   :  { %v1241_v7 = vadd.f32 %v2890_v48, %v1240_v47 }
 0x391   :  { %v1838_v46 = vpop.f32.mrf.mxu1 }
 0x392   :  { %1331 = vst.msk [vmem:[%s3088_s6 + $0xa0] sm:$0xff] %vm89_vm1, %v1241_v7 }
 0x393   :  { %v1243_v60 = vpop.f32.mrf.mxu1 }
 0x394   :  { %v1244_v42 = vadd.f32 %v2890_v48, %v1243_v60 }
 0x395   :  { %v1839_v38 = vpop.f32.mrf.mxu1 }
 0x396   :  { %1332 = vst.msk [vmem:[%s3088_s6 + $0xa8] sm:$0xff] %vm89_vm1, %v1244_v42 }
 0x397   :  { %v1248_v0 = vpop.f32.mrf.mxu1 }
 0x398   :  { %v1249_v41 = vadd.f32 %v2890_v48, %v1248_v0 }
 0x399   :  { %v1842_v43 = vpop.f32.mrf.mxu1 }
 0x39a   :  { %1333 = vst.msk [vmem:[%s3088_s6 + $0xb0] sm:$0xff] %vm89_vm1, %v1249_v41 }
 0x39b   :  { %v1251_v40 = vpop.f32.mrf.mxu1 }
 0x39c   :  { %v1252_v11 = vadd.f32 %v2890_v48, %v1251_v40 }
 0x39d   :  { %v1843_v14 = vpop.f32.mrf.mxu1 }
 0x39e   :  { %1334 = vst.msk [vmem:[%s3088_s6 + $0xb8] sm:$0xff] %vm89_vm1, %v1252_v11 }
 0x39f   :  { %v1256_v32 = vpop.f32.mrf.mxu1 }
 0x3a0   :  { %v1257_v9 = vadd.f32 %v2890_v48, %v1256_v32 }
 0x3a1   :  { %v1846_v36 = vpop.f32.mrf.mxu1 }
 0x3a2   :  { %1335 = vst.msk [vmem:[%s3088_s6 + $0xc0] sm:$0xff] %vm89_vm1, %v1257_v9 }
 0x3a3   :  { %v1259_v62 = vpop.f32.mrf.mxu1 }
 0x3a4   :  { %v1260_v1 = vadd.f32 %v2890_v48, %v1259_v62 }
 0x3a5   :  { %v1847_v34 = vpop.f32.mrf.mxu1 }
 0x3a6   :  { %1336 = vst.msk [vmem:[%s3088_s6 + $0xc8] sm:$0xff] %vm89_vm1, %v1260_v1 }
 0x3a7   :  { %v1264_v30 = vpop.f32.mrf.mxu1 }
 0x3a8   :  { %v1265_v18 = vadd.f32 %v2890_v48, %v1264_v30 }
 0x3a9   :  { %v1850_v12 = vpop.f32.mrf.mxu1 }
 0x3aa   :  { %1337 = vst.msk [vmem:[%s3088_s6 + $0xd0] sm:$0xff] %vm89_vm1, %v1265_v18 }
 0x3ab   :  { %v1267_v13 = vpop.f32.mrf.mxu1 }
 0x3ac   :  { %v1268_v15 = vadd.f32 %v2890_v48, %v1267_v13 }
 0x3ad   :  { %v1851_v35 = vpop.f32.mrf.mxu1 }
 0x3ae   :  { %1338 = vst.msk [vmem:[%s3088_s6 + $0xd8] sm:$0xff] %vm89_vm1, %v1268_v15 }
 0x3af   :  { %v1272_v37 = vpop.f32.mrf.mxu1 }
 0x3b0   :  { %v1273_v10 = vadd.f32 %v2890_v48, %v1272_v37 }
 0x3b1   :  { %v1854_v27 = vpop.f32.mrf.mxu1 }
 0x3b2   :  { %1339 = vst.msk [vmem:[%s3088_s6 + $0xe0] sm:$0xff] %vm89_vm1, %v1273_v10 }
 0x3b3   :  { %v1275_v51 = vpop.f32.mrf.mxu1 }
 0x3b4   :  { %v1276_v53 = vadd.f32 %v2890_v48, %v1275_v51 }
 0x3b5   :  { %v1855_v19 = vpop.f32.mrf.mxu1 }
 0x3b6   :  { %1340 = vst.msk [vmem:[%s3088_s6 + $0xe8] sm:$0xff] %vm89_vm1, %v1276_v53 }
 0x3b7   :  { %v1280_v39 = vpop.f32.mrf.mxu1 }
 0x3b8   :  { %v1281_v3 = vadd.f32 %v2890_v48, %v1280_v39 }
 0x3b9   :  { %v1858_v22 = vpop.f32.mrf.mxu1 }
 0x3ba   :  { %1341 = vst.msk [vmem:[%s3088_s6 + $0xf0] sm:$0xff] %vm89_vm1, %v1281_v3 }
 0x3bb   :  { %v1283_v45 = vpop.f32.mrf.mxu1 }
 0x3bc   :  { %v1284_v8 = vadd.f32 %v2890_v48, %v1283_v45 }
 0x3bd   :  { %v1859_v6 = vpop.f32.mrf.mxu1 }
 0x3be   :  { %1342 = vst.msk [vmem:[%s3088_s6 + $0xf8] sm:$0xff] %vm89_vm1, %v1284_v8 }
 0x3bf   :  { %v1288_v16 = vpop.f32.mrf.mxu1 }
 0x3c0   :  { %v1289_v20 = vadd.f32 %v2890_v48, %v1288_v16 }
 0x3c1   :  { %v1862_v49 = vpop.f32.mrf.mxu1 }
 0x3c2   :  { %1343 = vst.msk [vmem:[%s3088_s6 + $0x100] sm:$0xff] %vm89_vm1, %v1289_v20 }
 0x3c3   :  { %v1291_v5 = vpop.f32.mrf.mxu1 }
 0x3c4   :  { %v1292_v50 = vadd.f32 %v2890_v48, %v1291_v5 }
 0x3c5   :  { %v1863_v57 = vpop.f32.mrf.mxu1 }
 0x3c6   :  { %1344 = vst.msk [vmem:[%s3088_s6 + $0x108] sm:$0xff] %vm89_vm1, %v1292_v50 }
 0x3c7   :  { %v1296_v4 = vpop.f32.mrf.mxu1 }
 0x3c8   :  { %v1297_v52 = vadd.f32 %v2890_v48, %v1296_v4 }
 0x3c9   :  { %v1866_v55 = vpop.f32.mrf.mxu1 }
 0x3ca   :  { %1345 = vst.msk [vmem:[%s3088_s6 + $0x110] sm:$0xff] %vm89_vm1, %v1297_v52 }
 0x3cb   :  { %v1299_v31 = vpop.f32.mrf.mxu1 }
 0x3cc   :  { %v1300_v56 = vadd.f32 %v2890_v48, %v1299_v31 }
 0x3cd   :  { %v1867_v59 = vpop.f32.mrf.mxu1 }
 0x3ce   :  { %1346 = vst.msk [vmem:[%s3088_s6 + $0x118] sm:$0xff] %vm89_vm1, %v1300_v56 }
 0x3cf   :  { %v1304_v58 = vpop.f32.mrf.mxu1 }
 0x3d0   :  { %v1305_v61 = vadd.f32 %v2890_v48, %v1304_v58 }
 0x3d1   :  { %v1870_v26 = vpop.f32.mrf.mxu1 }
 0x3d2   :  { %1347 = vst.msk [vmem:[%s3088_s6 + $0x120] sm:$0xff] %vm89_vm1, %v1305_v61 }
 0x3d3   :  { %v1307_v33 = vpop.f32.mrf.mxu1 }
 0x3d4   :  { %v1308_v21 = vadd.f32 %v2890_v48, %v1307_v33 }
 0x3d5   :  { %v1871_v23 = vpop.f32.mrf.mxu1 }
 0x3d6   :  { %1348 = vst.msk [vmem:[%s3088_s6 + $0x128] sm:$0xff] %vm89_vm1, %v1308_v21 }

</bundles_post_ra>
